<compile_context>
chip_gen: v5e
topology: v5e:2x2
jax: 0.10.0
libtpu: 0.0.40
codegen_flags: <defaults>
</compile_context>

<pallas_src>
import math
import functools

import jax
import jax.numpy as jnp
from jax import lax
from jax.experimental import pallas as pl
from jax.experimental.pallas import tpu as pltpu


def _round_up(x, m):
    return (x + m - 1) // m * m


def _pick_tile_h(H, W, max_rows=512):
    """Largest divisor of H with th*W <= max_rows.

    Aims for th*W >= 256 so the matmul M dim fills the 256-wide MXU on
    v6e/v7x (128 suffices on v5e); max_rows bounds accumulator/slab size.
    """
    best = 1
    for d in range(1, H + 1):
        if H % d == 0 and d * W <= max_rows:
            best = d
    return best


def _vmem_budget_bytes():
    """Generation-aware VMEM cap (v5e/v6e: 128 MiB, v7x: 64 MiB per TC)."""
    default_cap = 64 * 2 ** 20          # conservative: assume v7x if unknown
    try:
        cap = int(getattr(pltpu.get_tpu_info(), "vmem_capacity_bytes",
                          default_cap))
    except Exception:
        cap = default_cap
    # Leave headroom for Mosaic internal scratch / spills.
    return max(cap - (12 << 20), 32 << 20)


def _conv_lrelu_kernel(x_ref, w_ref, o_ref, *, th, W, K, sub_c, neg_slope):
    # x_ref: (1, Hp, Wp, Cin_p)  padded image (resident across the inner axes)
    # w_ref: (K, K, Cin_p, tc)   pre-scaled, channel-padded weight tile
    # o_ref: (1, th, W, tc)      lane-dense output row tile
    r = pl.program_id(2)                       # row-tile index
    row0 = pl.multiple_of(r * th, th)          # start row in the padded image
    cin_p = x_ref.shape[-1]
    tc = o_ref.shape[-1]

    # 128-wide Cout sub-tiles keep each f32 accumulator small enough to stay
    # vreg-resident across all K*K taps; only one store per sub-tile.
    for s in range(tc // sub_c):
        c0 = s * sub_c
        acc = None
        for kh in range(K):
            # One slab load per (sub-tile, kh). The K shifted W-windows below
            # are static slices of this *value* (sublane shifts on the XLU),
            # replacing the K*K separate unaligned ref loads of the previous
            # version.
            slab = x_ref[0, pl.ds(row0 + kh, th), :, :]        # (th, Wp, Cin_p)
            for kw in range(K):
                xs = slab[:, kw:kw + W, :].reshape(th * W, cin_p)
                part = jnp.dot(xs, w_ref[kh, kw, :, c0:c0 + sub_c],
                               preferred_element_type=jnp.float32)
                acc = part if acc is None else acc + part
        # LeakyReLU(0.2) epilogue in f32 (v5e has no bf16 VALU), then a single
        # lane-dense (128-aligned) store.
        out = jnp.where(acc >= 0, acc, neg_slope * acc)
        o_ref[:, :, :, c0:c0 + sub_c] = (
            out.reshape(1, th, W, sub_c).astype(o_ref.dtype))


def decoder_layer_forward(x_nchw, weight_oihw, *, neg_slope=0.2,
                          compute_dtype=jnp.bfloat16, tile_h=None,
                          tile_c=None):
    """DecoderLayer(in_ch, out_ch, K, upsample=False, bias=True, activate=True)."""
    N, Cin, H, W = x_nchw.shape
    Cout, Cin_w, K, K2 = weight_oihw.shape
    assert Cin == Cin_w and K == K2
    assert K % 2 == 1, "'same' output size requires odd kernel_size"
    pad = K // 2
    scale = 1.0 / math.sqrt(Cin * K * K)

    cdt = jnp.dtype(compute_dtype if compute_dtype is not None else jnp.bfloat16)
    out_dtype = x_nchw.dtype
    cin_p = _round_up(Cin, 128)
    cout_p = _round_up(Cout, 128)

    # --- wrapper glue: transpose + halo pad + channel pad (one pass each) ---
    x_nhwc = jnp.transpose(x_nchw, (0, 2, 3, 1)).astype(cdt)
    x_pad = jnp.pad(x_nhwc, ((0, 0), (pad, pad), (pad, pad), (0, cin_p - Cin)))

    w = (weight_oihw.astype(jnp.float32) * scale).astype(cdt)
    w = jnp.transpose(w, (2, 3, 1, 0))                         # (K,K,Cin,Cout)
    w = jnp.pad(w, ((0, 0), (0, 0), (0, cin_p - Cin), (0, cout_p - Cout)))

    th = tile_h if tile_h is not None else _pick_tile_h(H, W)
    assert H % th == 0
    tc = tile_c if tile_c is not None else (256 if cout_p % 256 == 0 else 128)
    assert cout_p % tc == 0 and tc % 128 == 0
    sub_c = 128
    n_rt = H // th
    n_ct = cout_p // tc
    Hp, Wp = H + 2 * pad, W + 2 * pad

    in_b = jnp.dtype(cdt).itemsize
    out_b = jnp.dtype(out_dtype).itemsize
    budget = _vmem_budget_bytes()

    # Resident padded image: single-buffer it when double-buffering would eat
    # more than half of the generation's VMEM budget (matters on v7x's
    # 64 MiB/TC for realistic decoder activations). Its block index is
    # constant across the inner (c, r) axes, so one buffer suffices per image;
    # the weight/output tiles keep normal double-buffering.
    x_bytes = Hp * Wp * cin_p * in_b
    if 2 * x_bytes > budget // 2:
        x_spec = pl.BlockSpec((1, Hp, Wp, cin_p), lambda n, c, r: (n, 0, 0, 0),
                              pipeline_mode=pl.Buffered(1))
        x_bufs = 1
    else:
        x_spec = pl.BlockSpec((1, Hp, Wp, cin_p), lambda n, c, r: (n, 0, 0, 0))
        x_bufs = 2

    vmem_est = (x_bufs * x_bytes                     # resident padded image
                + 2 * K * K * cin_p * tc * in_b      # weight tile (double buf)
                + 2 * th * W * tc * out_b            # output tile (double buf)
                + th * W * sub_c * 4                 # live f32 sub-accumulator
                + th * Wp * cin_p * 4)               # hoisted x slab value
    vmem_limit = int(min(max(int(vmem_est * 1.5) + (4 << 20), 16 << 20),
                         budget))

    flops = 2 * N * H * W * K * K * cin_p * cout_p
    bytes_accessed = (x_pad.size * in_b + w.size * in_b
                      + N * H * W * cout_p * out_b)

    kernel = functools.partial(_conv_lrelu_kernel, th=th, W=W, K=K,
                               sub_c=sub_c, neg_slope=neg_slope)

    # NOTE(v7x megacore): the leading "parallel" axis is what gets sharded
    # across the 2 TensorCores; with N >= 2 that's the batch axis.
    # TODO(synk): when N == 1, rotate the grid so n_ct or n_rt leads.
    out_pad = pl.pallas_call(
        kernel,
        out_shape=jax.ShapeDtypeStruct((N, H, W, cout_p), out_dtype),
        grid_spec=pltpu.PrefetchScalarGridSpec(
            num_scalar_prefetch=0,
            grid=(N, n_ct, n_rt),
            in_specs=[
                x_spec,
                # weight tile along Cout: re-fetched only when c changes
                pl.BlockSpec((K, K, cin_p, tc), lambda n, c, r: (0, 0, 0, c)),
            ],
            out_specs=pl.BlockSpec((1, th, W, tc), lambda n, c, r: (n, r, 0, c)),
        ),
        compiler_params=pltpu.CompilerParams(
            dimension_semantics=("parallel", "parallel", "parallel"),
            vmem_limit_bytes=vmem_limit,
        ),
        cost_estimate=pl.CostEstimate(flops=flops, transcendentals=0,
                                      bytes_accessed=bytes_accessed),
    )(x_pad, w)

    # strip channel padding, back to the PyTorch NCHW convention
    return jnp.transpose(out_pad[..., :Cout], (0, 3, 1, 2))


def _reference(x_nchw, weight_oihw, *, neg_slope=0.2):
    Cout, Cin, K, _ = weight_oihw.shape
    pad = K // 2
    scale = 1.0 / math.sqrt(Cin * K * K)
    out = lax.conv_general_dilated(
        x_nchw, weight_oihw * scale,
        window_strides=(1, 1),
        padding=((pad, pad), (pad, pad)),
        dimension_numbers=("NCHW", "OIHW", "NCHW"),
        precision=lax.Precision.HIGHEST,
    )
    return jnp.where(out >= 0, out, neg_slope * out)


if __name__ == "__main__":
    key = jax.random.PRNGKey(0)
    kx, kw1, kw2 = jax.random.split(key, 3)

    N, Cin, Cout, H, W, K = 2, 4, 8, 16, 16, 3
    x = jax.random.normal(kx, (N, Cin, H, W), dtype=jnp.float32)
    # EqualConv2d weight ~ torch.randn(out_channel, in_channel, K, K)
    weight = jax.random.normal(kw1, (Cout, Cin, K, K), dtype=jnp.float32)
    ref = _reference(x, weight)

    # 1) f32 MXU path, explicit row tiling (2 row tiles): tight check.
    out_f32 = jax.block_until_ready(
        decoder_layer_forward(x, weight, compute_dtype=jnp.float32, tile_h=8))
    assert out_f32.shape == (N, Cout, H, W)
    assert jnp.allclose(out_f32, ref, atol=1e-3, rtol=1e-3), "f32 mismatch"

    # 2) Production default: bf16 MXU inputs, auto tile picker (th*W = 256).
    out_bf16 = jax.block_until_ready(decoder_layer_forward(x, weight))
    assert out_bf16.shape == (N, Cout, H, W)
    assert jnp.allclose(out_bf16, ref, atol=5e-2, rtol=5e-2), "bf16 mismatch"

    # 3) Wider Cout (cout_p=256 -> tc=256, two 128-wide sub-tiles per step).
    Cout2 = 256
    weight2 = jax.random.normal(kw2, (Cout2, Cin, K, K), dtype=jnp.float32)
    ref2 = _reference(x, weight2)
    out2 = jax.block_until_ready(
        decoder_layer_forward(x, weight2, tile_h=8))
    assert out2.shape == (N, Cout2, H, W)
    assert jnp.allclose(out2, ref2, atol=5e-2, rtol=5e-2), "wide-Cout mismatch"

    print("KERNEL_OK")
</pallas_src>

<mosaic_0001>
module attributes {stable_mosaic.version = 11 : i64} {
  func.func @_conv_lrelu_kernel(%arg0: i32, %arg1: i32, %arg2: i32, %arg3: memref<1x18x18x128xf32, #tpu.memory_space<vmem>>, %arg4: memref<3x3x128x128xf32, #tpu.memory_space<vmem>>, %arg5: memref<1x8x16x128xf32, #tpu.memory_space<vmem>>) attributes {dimension_semantics = [#tpu.dimension_semantics<parallel>, #tpu.dimension_semantics<parallel>, #tpu.dimension_semantics<parallel>], iteration_bounds = array<i64: 2, 1, 2>, scalar_prefetch = 0 : i64, scratch_operands = 0 : i64, tpu.core_type = #tpu.core_type<tc>, window_params = [{transform_indices = @transform_0, window_bounds = array<i64: 1, 18, 18, 128>}, {transform_indices = @transform_1, window_bounds = array<i64: 3, 3, 128, 128>}, {transform_indices = @transform_2, window_bounds = array<i64: 1, 8, 16, 128>}]} {
    %c8_i32 = arith.constant 8 : i32
    %0 = arith.muli %arg2, %c8_i32 : i32
    %1 = tpu.assume_multiple %0, 8 : i32
    %c0_i32 = arith.constant 0 : i32
    %2 = arith.addi %1, %c0_i32 : i32
    %c0 = arith.constant 0 : index
    %3 = arith.index_cast %2 : i32 to index
    %c0_0 = arith.constant 0 : index
    %c0_1 = arith.constant 0 : index
    %4 = vector.load %arg3[%c0, %3, %c0_0, %c0_1] : memref<1x18x18x128xf32, #tpu.memory_space<vmem>>, vector<1x8x18x128xf32>
    %5 = vector.shape_cast %4 : vector<1x8x18x128xf32> to vector<8x18x128xf32>
    %6 = vector.extract_strided_slice %5 {offsets = [0, 0, 0], sizes = [8, 16, 128], strides = [1, 1, 1]} : vector<8x18x128xf32> to vector<8x16x128xf32>
    %7 = vector.shape_cast %6 : vector<8x16x128xf32> to vector<128x128xf32>
    %c0_2 = arith.constant 0 : index
    %c0_3 = arith.constant 0 : index
    %c0_4 = arith.constant 0 : index
    %c0_5 = arith.constant 0 : index
    %8 = vector.load %arg4[%c0_2, %c0_3, %c0_4, %c0_5] : memref<3x3x128x128xf32, #tpu.memory_space<vmem>>, vector<1x1x128x128xf32>
    %9 = vector.shape_cast %8 : vector<1x1x128x128xf32> to vector<128x128xf32>
    %cst = arith.constant dense<0.000000e+00> : vector<128x128xf32>
    %10 = tpu.matmul %7, %9, %cst {dimension_numbers = #tpu.dot_dimension_numbers<[1], [0], [0], [1], [0, 0, 1, 1], [], []>} : vector<128x128xf32>, vector<128x128xf32>, vector<128x128xf32> -> vector<128x128xf32>
    %11 = vector.extract_strided_slice %5 {offsets = [0, 1, 0], sizes = [8, 16, 128], strides = [1, 1, 1]} : vector<8x18x128xf32> to vector<8x16x128xf32>
    %12 = vector.shape_cast %11 : vector<8x16x128xf32> to vector<128x128xf32>
    %c0_6 = arith.constant 0 : index
    %c1 = arith.constant 1 : index
    %c0_7 = arith.constant 0 : index
    %c0_8 = arith.constant 0 : index
    %13 = vector.load %arg4[%c0_6, %c1, %c0_7, %c0_8] : memref<3x3x128x128xf32, #tpu.memory_space<vmem>>, vector<1x1x128x128xf32>
    %14 = vector.shape_cast %13 : vector<1x1x128x128xf32> to vector<128x128xf32>
    %cst_9 = arith.constant dense<0.000000e+00> : vector<128x128xf32>
    %15 = tpu.matmul %12, %14, %cst_9 {dimension_numbers = #tpu.dot_dimension_numbers<[1], [0], [0], [1], [0, 0, 1, 1], [], []>} : vector<128x128xf32>, vector<128x128xf32>, vector<128x128xf32> -> vector<128x128xf32>
    %16 = arith.addf %10, %15 : vector<128x128xf32>
    %17 = vector.extract_strided_slice %5 {offsets = [0, 2, 0], sizes = [8, 16, 128], strides = [1, 1, 1]} : vector<8x18x128xf32> to vector<8x16x128xf32>
    %18 = vector.shape_cast %17 : vector<8x16x128xf32> to vector<128x128xf32>
    %c0_10 = arith.constant 0 : index
    %c2 = arith.constant 2 : index
    %c0_11 = arith.constant 0 : index
    %c0_12 = arith.constant 0 : index
    %19 = vector.load %arg4[%c0_10, %c2, %c0_11, %c0_12] : memref<3x3x128x128xf32, #tpu.memory_space<vmem>>, vector<1x1x128x128xf32>
    %20 = vector.shape_cast %19 : vector<1x1x128x128xf32> to vector<128x128xf32>
    %cst_13 = arith.constant dense<0.000000e+00> : vector<128x128xf32>
    %21 = tpu.matmul %18, %20, %cst_13 {dimension_numbers = #tpu.dot_dimension_numbers<[1], [0], [0], [1], [0, 0, 1, 1], [], []>} : vector<128x128xf32>, vector<128x128xf32>, vector<128x128xf32> -> vector<128x128xf32>
    %22 = arith.addf %16, %21 : vector<128x128xf32>
    %c1_i32 = arith.constant 1 : i32
    %23 = arith.addi %1, %c1_i32 : i32
    %c0_14 = arith.constant 0 : index
    %24 = arith.index_cast %23 : i32 to index
    %c0_15 = arith.constant 0 : index
    %c0_16 = arith.constant 0 : index
    %25 = vector.load %arg3[%c0_14, %24, %c0_15, %c0_16] : memref<1x18x18x128xf32, #tpu.memory_space<vmem>>, vector<1x8x18x128xf32>
    %26 = vector.shape_cast %25 : vector<1x8x18x128xf32> to vector<8x18x128xf32>
    %27 = vector.extract_strided_slice %26 {offsets = [0, 0, 0], sizes = [8, 16, 128], strides = [1, 1, 1]} : vector<8x18x128xf32> to vector<8x16x128xf32>
    %28 = vector.shape_cast %27 : vector<8x16x128xf32> to vector<128x128xf32>
    %c1_17 = arith.constant 1 : index
    %c0_18 = arith.constant 0 : index
    %c0_19 = arith.constant 0 : index
    %c0_20 = arith.constant 0 : index
    %29 = vector.load %arg4[%c1_17, %c0_18, %c0_19, %c0_20] : memref<3x3x128x128xf32, #tpu.memory_space<vmem>>, vector<1x1x128x128xf32>
    %30 = vector.shape_cast %29 : vector<1x1x128x128xf32> to vector<128x128xf32>
    %cst_21 = arith.constant dense<0.000000e+00> : vector<128x128xf32>
    %31 = tpu.matmul %28, %30, %cst_21 {dimension_numbers = #tpu.dot_dimension_numbers<[1], [0], [0], [1], [0, 0, 1, 1], [], []>} : vector<128x128xf32>, vector<128x128xf32>, vector<128x128xf32> -> vector<128x128xf32>
    %32 = arith.addf %22, %31 : vector<128x128xf32>
    %33 = vector.extract_strided_slice %26 {offsets = [0, 1, 0], sizes = [8, 16, 128], strides = [1, 1, 1]} : vector<8x18x128xf32> to vector<8x16x128xf32>
    %34 = vector.shape_cast %33 : vector<8x16x128xf32> to vector<128x128xf32>
    %c1_22 = arith.constant 1 : index
    %c1_23 = arith.constant 1 : index
    %c0_24 = arith.constant 0 : index
    %c0_25 = arith.constant 0 : index
    %35 = vector.load %arg4[%c1_22, %c1_23, %c0_24, %c0_25] : memref<3x3x128x128xf32, #tpu.memory_space<vmem>>, vector<1x1x128x128xf32>
    %36 = vector.shape_cast %35 : vector<1x1x128x128xf32> to vector<128x128xf32>
    %cst_26 = arith.constant dense<0.000000e+00> : vector<128x128xf32>
    %37 = tpu.matmul %34, %36, %cst_26 {dimension_numbers = #tpu.dot_dimension_numbers<[1], [0], [0], [1], [0, 0, 1, 1], [], []>} : vector<128x128xf32>, vector<128x128xf32>, vector<128x128xf32> -> vector<128x128xf32>
    %38 = arith.addf %32, %37 : vector<128x128xf32>
    %39 = vector.extract_strided_slice %26 {offsets = [0, 2, 0], sizes = [8, 16, 128], strides = [1, 1, 1]} : vector<8x18x128xf32> to vector<8x16x128xf32>
    %40 = vector.shape_cast %39 : vector<8x16x128xf32> to vector<128x128xf32>
    %c1_27 = arith.constant 1 : index
    %c2_28 = arith.constant 2 : index
    %c0_29 = arith.constant 0 : index
    %c0_30 = arith.constant 0 : index
    %41 = vector.load %arg4[%c1_27, %c2_28, %c0_29, %c0_30] : memref<3x3x128x128xf32, #tpu.memory_space<vmem>>, vector<1x1x128x128xf32>
    %42 = vector.shape_cast %41 : vector<1x1x128x128xf32> to vector<128x128xf32>
    %cst_31 = arith.constant dense<0.000000e+00> : vector<128x128xf32>
    %43 = tpu.matmul %40, %42, %cst_31 {dimension_numbers = #tpu.dot_dimension_numbers<[1], [0], [0], [1], [0, 0, 1, 1], [], []>} : vector<128x128xf32>, vector<128x128xf32>, vector<128x128xf32> -> vector<128x128xf32>
    %44 = arith.addf %38, %43 : vector<128x128xf32>
    %c2_i32 = arith.constant 2 : i32
    %45 = arith.addi %1, %c2_i32 : i32
    %c0_32 = arith.constant 0 : index
    %46 = arith.index_cast %45 : i32 to index
    %c0_33 = arith.constant 0 : index
    %c0_34 = arith.constant 0 : index
    %47 = vector.load %arg3[%c0_32, %46, %c0_33, %c0_34] : memref<1x18x18x128xf32, #tpu.memory_space<vmem>>, vector<1x8x18x128xf32>
    %48 = vector.shape_cast %47 : vector<1x8x18x128xf32> to vector<8x18x128xf32>
    %49 = vector.extract_strided_slice %48 {offsets = [0, 0, 0], sizes = [8, 16, 128], strides = [1, 1, 1]} : vector<8x18x128xf32> to vector<8x16x128xf32>
    %50 = vector.shape_cast %49 : vector<8x16x128xf32> to vector<128x128xf32>
    %c2_35 = arith.constant 2 : index
    %c0_36 = arith.constant 0 : index
    %c0_37 = arith.constant 0 : index
    %c0_38 = arith.constant 0 : index
    %51 = vector.load %arg4[%c2_35, %c0_36, %c0_37, %c0_38] : memref<3x3x128x128xf32, #tpu.memory_space<vmem>>, vector<1x1x128x128xf32>
    %52 = vector.shape_cast %51 : vector<1x1x128x128xf32> to vector<128x128xf32>
    %cst_39 = arith.constant dense<0.000000e+00> : vector<128x128xf32>
    %53 = tpu.matmul %50, %52, %cst_39 {dimension_numbers = #tpu.dot_dimension_numbers<[1], [0], [0], [1], [0, 0, 1, 1], [], []>} : vector<128x128xf32>, vector<128x128xf32>, vector<128x128xf32> -> vector<128x128xf32>
    %54 = arith.addf %44, %53 : vector<128x128xf32>
    %55 = vector.extract_strided_slice %48 {offsets = [0, 1, 0], sizes = [8, 16, 128], strides = [1, 1, 1]} : vector<8x18x128xf32> to vector<8x16x128xf32>
    %56 = vector.shape_cast %55 : vector<8x16x128xf32> to vector<128x128xf32>
    %c2_40 = arith.constant 2 : index
    %c1_41 = arith.constant 1 : index
    %c0_42 = arith.constant 0 : index
    %c0_43 = arith.constant 0 : index
    %57 = vector.load %arg4[%c2_40, %c1_41, %c0_42, %c0_43] : memref<3x3x128x128xf32, #tpu.memory_space<vmem>>, vector<1x1x128x128xf32>
    %58 = vector.shape_cast %57 : vector<1x1x128x128xf32> to vector<128x128xf32>
    %cst_44 = arith.constant dense<0.000000e+00> : vector<128x128xf32>
    %59 = tpu.matmul %56, %58, %cst_44 {dimension_numbers = #tpu.dot_dimension_numbers<[1], [0], [0], [1], [0, 0, 1, 1], [], []>} : vector<128x128xf32>, vector<128x128xf32>, vector<128x128xf32> -> vector<128x128xf32>
    %60 = arith.addf %54, %59 : vector<128x128xf32>
    %61 = vector.extract_strided_slice %48 {offsets = [0, 2, 0], sizes = [8, 16, 128], strides = [1, 1, 1]} : vector<8x18x128xf32> to vector<8x16x128xf32>
    %62 = vector.shape_cast %61 : vector<8x16x128xf32> to vector<128x128xf32>
    %c2_45 = arith.constant 2 : index
    %c2_46 = arith.constant 2 : index
    %c0_47 = arith.constant 0 : index
    %c0_48 = arith.constant 0 : index
    %63 = vector.load %arg4[%c2_45, %c2_46, %c0_47, %c0_48] : memref<3x3x128x128xf32, #tpu.memory_space<vmem>>, vector<1x1x128x128xf32>
    %64 = vector.shape_cast %63 : vector<1x1x128x128xf32> to vector<128x128xf32>
    %cst_49 = arith.constant dense<0.000000e+00> : vector<128x128xf32>
    %65 = tpu.matmul %62, %64, %cst_49 {dimension_numbers = #tpu.dot_dimension_numbers<[1], [0], [0], [1], [0, 0, 1, 1], [], []>} : vector<128x128xf32>, vector<128x128xf32>, vector<128x128xf32> -> vector<128x128xf32>
    %66 = arith.addf %60, %65 : vector<128x128xf32>
    %cst_50 = arith.constant 0.000000e+00 : f32
    %67 = vector.broadcast %cst_50 : f32 to vector<128x128xf32>
    %68 = arith.cmpf oge, %66, %67 : vector<128x128xf32>
    %cst_51 = arith.constant 2.000000e-01 : f32
    %69 = vector.broadcast %cst_51 : f32 to vector<128x128xf32>
    %70 = arith.mulf %69, %66 : vector<128x128xf32>
    %71 = arith.select %68, %66, %70 : vector<128x128xi1>, vector<128x128xf32>
    %72 = vector.shape_cast %71 : vector<128x128xf32> to vector<1x8x16x128xf32>
    %c0_52 = arith.constant 0 : index
    %c0_53 = arith.constant 0 : index
    %c0_54 = arith.constant 0 : index
    %c0_55 = arith.constant 0 : index
    %73 = vector.load %arg5[%c0_52, %c0_53, %c0_54, %c0_55] : memref<1x8x16x128xf32, #tpu.memory_space<vmem>>, vector<1x8x16x128xf32>
    tpu.vector_store %arg5[%c0_52, %c0_53, %c0_54, %c0_55], %72 {strides = array<i32>} : memref<1x8x16x128xf32, #tpu.memory_space<vmem>>, vector<1x8x16x128xf32>,
    return
  }
  func.func @transform_0(%arg0: i32, %arg1: i32, %arg2: i32) -> (i32, i32, i32, i32) {
    %c0_i32 = arith.constant 0 : i32
    %c0_i32_0 = arith.constant 0 : i32
    %c0_i32_1 = arith.constant 0 : i32
    %c0_i32_2 = arith.constant 0 : i32
    return %arg0, %c0_i32, %c0_i32_0, %c0_i32_1 : i32, i32, i32, i32
  }
  func.func @transform_1(%arg0: i32, %arg1: i32, %arg2: i32) -> (i32, i32, i32, i32) {
    %c0_i32 = arith.constant 0 : i32
    %c0_i32_0 = arith.constant 0 : i32
    %c0_i32_1 = arith.constant 0 : i32
    %c0_i32_2 = arith.constant 0 : i32
    return %c0_i32, %c0_i32_0, %c0_i32_1, %arg1 : i32, i32, i32, i32
  }
  func.func @transform_2(%arg0: i32, %arg1: i32, %arg2: i32) -> (i32, i32, i32, i32) {
    %c0_i32 = arith.constant 0 : i32
    %c0_i32_0 = arith.constant 0 : i32
    return %arg0, %arg2, %c0_i32, %arg1 : i32, i32, i32, i32
  }
}

</mosaic_0001>

<bundles_post_ra>
// kernel: tpu_custom_call.1
= control target key start
LH: loop header
LB: loop body
LE: loop exit
PB: predicated region body
PF: predicated region fallthrough
CT: control target
= control target key end

     0   :  { %7 = vsyncpa [#allocation3], 0  ;;  %s3278_s0 = inlined_call_operand.vmem [shape: f32[2,18,18,128], index: 0, kind: input, shape index: {}]   ;;  %s3279_s1 = inlined_call_operand.vmem [shape: f32[3,3,128,128], index: 1, kind: input, shape index: {}]   ;;  %s3280_s2 = inlined_call_operand.hbm [shape: f32[2,16,16,128], index: 2, kind: output, shape index: {}]  }
   0x1   :  { %9 = vsyncpa [#allocation3 + $0x1], 0  ;;  %s2145_s9 = smov 0   ;;  %s2147_s10 = smov 0  }
   0x2   :  { %s2149_s11 = smov 0   ;;  %s2151_s12 = smov 0  }
   0x3   :  { %s2153_s13 = smov 0   ;;  %s2155_s14 = smov 0  }
   0x4   :  { %s2157_s15 = smov 0   ;;  %s2159_s16 = smov 0  }
   0x5 LB: > { %s1712_s17 = sadd.s32 4294967295, %s2126_s16   ;;  %s1713_s18 = sadd.s32 4294967294, %s2126_s16   ;;  %s2126_s16 = sphi %s2159_s16, %s15_s16   ;;  %s2122_s15 = sphi %s2157_s15, %s3291_s15   ;;  %s2118_s14 = sphi %s2155_s14, %s3290_s14   ;;  %s2114_s13 = sphi %s2153_s13, %s3289_s13   ;;  %s2110_s12 = sphi %s2151_s12, %s3288_s12   ;;  %s2106_s11 = sphi %s2149_s11, %s3287_s11   ;;  %s2102_s10 = sphi %s2147_s10, %s3286_s10   ;;  %s2098_s9 = sphi %s2145_s9, %s3285_s9  }
   0x6   : > { %s27_s19 = sadd.s32 1, %s2118_s14  ;;  %s34_s20 = sadd.s32 1, %s2122_s15 }
   0x7   : > { %p28_p0 = scmp.ge.s32.totalorder %s27_s19, 2  ;;  %p107_p1 = scmp.ne.s32.totalorder %s2106_s11, %s2102_s10 }
   0x8   : > { %p108_p2 = scmp.eq.s32.totalorder %s1712_s17, 3  ;;  %p113_p5 = scmp.ne.s32.totalorder %s2102_s10, %s2098_s9 }
   0x9   : > { %s3293_s19 = smov (%p28_p0, %s27_s19), 0  ;;  %s3295_s20 = smov (!%p28_p0, %s34_s20), %s2122_s15 }
   0xa   : > { %s91_s21 = ssub.s32 %s2118_s14, %s3293_s19  ;;  %p2196_p3 = por %p108_p2, %p107_p1 }
   0xb   : > { %p36_p4 = scmp.ge.s32.totalorder %s3295_s20, 2  ;;  %p114_p6 = scmp.eq.s32.totalorder %s1713_s18, 3 }
   0xc   : > { %p1717_p7 = scmp.ge.s32.totalorder %s2126_s16, 1  ;;  %p147_p9 = scmp.lt.s32.totalorder %s2126_s16, 5 }
   0xd   : > { %s3297_s20 = smov (%p36_p4, %s3295_s20), 0  ;;  %p2205_p8 = por %p114_p6, %p113_p5 }
   0xe   : > { %s90_s24 = ssub.s32 %s2122_s15, %s3297_s20  ;;  %s97_s25 = sadd.s32 1, %s2106_s11 }
   0xf   : > { %s92_s26 = sor.u32 %s91_s21, %s90_s24  ;;  %p148_p10 = pnand %p1717_p7, %p147_p9 }
  0x10   : > { %p95_p11 = scmp.eq.s32.totalorder %s92_s26, 0 }
  0x11   : > { %151 = sbr.rel (%p148_p10) target bundleno = 485 (0x1e5), region = 28 }
  0x12   : > { %s2214_s27 = scalar_select %p95_p11, %s2106_s11, %s97_s25  }
  0x16   : > { %v1737_v0 = vld [vmem:[%s3279_s1 + $0xf8] sm:$0xff]  ;;  %v1736_v1 = vld [vmem:[%s3279_s1 + $0xf0] sm:$0xff]  ;;  %v1735_v2 = vld [vmem:[%s3279_s1 + $0xe8] sm:$0xff]  ;;  %p173_p12 = scmp.lt.s32.totalorder %s2114_s13, 1  ;;  %s1721_s5 = smul.u32 192, %s2110_s12  ;;  %vm250_vm0 = vcmask 1046528  }
  0x17   : > { %1910 = vmatpush.msra.mxu1 %v1737_v0  ;;  %1911 = vmatpush.msra.mxu2 %v1737_v0  ;;  %v1734_v3 = vld [vmem:[%s3279_s1 + $0xe0] sm:$0xff]  ;;  %v1733_v4 = vld [vmem:[%s3279_s1 + $0xd8] sm:$0xff]  ;;  %v1732_v5 = vld [vmem:[%s3279_s1 + $0xd0] sm:$0xff]  ;;  %vm454_vm1 = vcmask 1045504   ;;  %s1909_s29 = sshll.u32 %s2110_s12, 4  ;;  %s1905_s30 = sshll.u32 %s2114_s13, 5 }
  0x18   : > { %1912 = vmatpush.msra.mxu3 %v1737_v0  ;;  %324 = vmatpush.msra.mxu0 %v1737_v0  ;;  %s174_s18 = scalar_select %p173_p12, %s2114_s13, 1  ;;  %v1731_v6 = vld [vmem:[%s3279_s1 + $0xc8] sm:$0xff]  ;;  %v1730_v7 = vld [vmem:[%s3279_s1 + $0xc0] sm:$0xff]  ;;  %v1729_v8 = vld [vmem:[%s3279_s1 + $0xb8] sm:$0xff] }
  0x19   : > { %1913 = vmatpush.msra.mxu1 %v1736_v1  ;;  %1914 = vmatpush.msra.mxu2 %v1736_v1  ;;  %v1728_v9 = vld [vmem:[%s3279_s1 + $0xb0] sm:$0xff]  ;;  %v1727_v10 = vld [vmem:[%s3279_s1 + $0xa8] sm:$0xff]  ;;  %v1726_v11 = vld [vmem:[%s3279_s1 + $0xa0] sm:$0xff]  ;;  %s1601_s3 = sadd.s32 %s1909_s29, %s1905_s30 }
  0x1a   : > { %1915 = vmatpush.msra.mxu3 %v1736_v1  ;;  %325 = vmatpush.msra.mxu0 %v1736_v1  ;;  %s1958_s28 = smul.u32 432, %s174_s18  ;;  %v1725_v12 = vld [vmem:[%s3279_s1 + $0x98] sm:$0xff]  ;;  %v1724_v17 = vld [vmem:[%s3279_s1 + $0x90] sm:$0xff]  ;;  %v1723_v24 = vld [vmem:[%s3279_s1 + $0x88] sm:$0xff]  ;;  %s1906_s4 = sshll.u32 %s1601_s3, 3 }
  0x1b   : > { %1916 = vmatpush.msra.mxu1 %v1735_v2  ;;  %1917 = vmatpush.msra.mxu2 %v1735_v2  ;;  %v1722_v27 = vld [vmem:[%s3279_s1 + $0x80] sm:$0xff]  ;;  %v1753_v32 = vld [vmem:[%s3279_s1 + $0x178] sm:$0xff]  ;;  %v1752_v39 = vld [vmem:[%s3279_s1 + $0x170] sm:$0xff] }
  0x1c   : > { %1918 = vmatpush.msra.mxu3 %v1735_v2  ;;  %326 = vmatpush.msra.mxu0 %v1735_v2  ;;  %s177_s8 = scalar_lea.vmem %s3278_s0, %s1958_s28  ;;  %v225_v34 = vld [vmem:[%s3279_s1 + $0x78] sm:$0xff]  ;;  %v224_v41 = vld [vmem:[%s3279_s1 + $0x70] sm:$0xff]  ;;  %v1751_v44 = vld [vmem:[%s3279_s1 + $0x168] sm:$0xff] }
  0x1d   : > { %1919 = vmatpush.msra.mxu1 %v1734_v3  ;;  %1920 = vmatpush.msra.mxu2 %v1734_v3  ;;  %s2255_s25 = scalar_lea.vmem %s177_s8, %s1721_s5  ;;  %v1795_v40 = vld [vmem:[%s3279_s1 + $0x1f8] sm:$0xff]  ;;  %v1794_v45 = vld [vmem:[%s3279_s1 + $0x1f0] sm:$0xff]  ;;  %v223_v47 = vld [vmem:[%s3279_s1 + $0x68] sm:$0xff]  ;;  %s1603_s5 = scalar_lea.hbm %s3280_s2, %s1906_s4 }
  0x1e   : > { %1921 = vmatpush.msra.mxu3 %v1734_v3  ;;  %327 = vmatpush.msra.mxu0 %v1734_v3  ;;  %v2264_v13 = vld [vmem:[%s2255_s25 + $0x30] sm:$0xff]  ;;  %v2267_v14 = vld [vmem:[%s2255_s25 + $0x38] sm:$0xff]  ;;  %v2270_v15 = vld [vmem:[%s2255_s25 + $0x60] sm:$0xff]  ;;  %s1606_s7 = sshll.u32 %s1603_s5, 4  ;;  %s1607_s7 = int_to_ptr.hbm [resolvable:$true] %s1606_s7 }
  0x1f   : > { %1922 = vmatpush.msra.mxu1 %v1733_v4  ;;  %1923 = vmatpush.msra.mxu2 %v1733_v4  ;;  %v2273_v16 = vld [vmem:[%s2255_s25 + $0x68] sm:$0xff]  ;;  %v2279_v18 = vld [vmem:[%s2255_s25 + $0x90] sm:$0xff]  ;;  %v2282_v19 = vld [vmem:[%s2255_s25 + $0x98] sm:$0xff]  ;;  %v261_v20 = vrot.slane %v2264_v13, 1  ;;  %v2286_v21 = vrot.slane %v2267_v14, 1  ;;  %v271_v22 = vrot.slane %v2270_v15, 1 }
  0x20   : > { %1924 = vmatpush.msra.mxu3 %v1733_v4  ;;  %328 = vmatpush.msra.mxu0 %v1733_v4  ;;  %v2290_v23 = vrot.slane %v2273_v16, 1  ;;  %v281_v25 = vrot.slane %v2279_v18, 1  ;;  %v2297_v26 = vrot.slane %v2282_v19, 1  ;;  %v2303_v28 = vld [vmem:[%s2255_s25] sm:$0xff]  ;;  %v2306_v29 = vld [vmem:[%s2255_s25 + $0x8] sm:$0xff]  ;;  %v1749_v55 = vld [vmem:[%s3279_s1 + $0x158] sm:$0xff] }
  0x21   : > { %1925 = vmatpush.msra.mxu1 %v1732_v5  ;;  %1926 = vmatpush.msra.mxu2 %v1732_v5  ;;  %v2310_v30 = vsel %vm250_vm0, %v261_v20, %v2286_v21  ;;  %v2320_v33 = vld [vmem:[%s2255_s25 + $0x70] sm:$0x3]  ;;  %v2330_v36 = vld [vmem:[%s2255_s25 + $0x40] sm:$0x3]  ;;  %v251_v37 = vrot.slane %v2303_v28, 1  ;;  %v252_v38 = vrot.slane %v2306_v29, 1 }
  0x22   : > { %1927 = vmatpush.msra.mxu3 %v1732_v5  ;;  %329 = vmatpush.msra.mxu0 %v1732_v5  ;;  %v2314_v31 = vsel %vm250_vm0, %v271_v22, %v2290_v23  ;;  %v2327_v35 = vsel %vm250_vm0, %v281_v25, %v2297_v26  ;;  %v274_v42 = vrot.slane %v2320_v33, 1  ;;  %v2347_v43 = vld [vmem:[%s2255_s25 + $0xa0] sm:$0x3]  ;;  %v264_v46 = vrot.slane %v2330_v36, 1  ;;  %v1793_v50 = vld [vmem:[%s3279_s1 + $0x1e8] sm:$0xff]  ;;  %v221_v57 = vld [vmem:[%s3279_s1 + $0x58] sm:$0xff] }
  0x23   : > { %1928 = vmatpush.msra.mxu1 %v1731_v6  ;;  %1929 = vmatpush.msra.mxu2 %v1731_v6  ;;  %v253_v48 = vsel %vm250_vm0, %v251_v37, %v252_v38  ;;  %v1750_v49 = vld [vmem:[%s3279_s1 + $0x160] sm:$0xff]  ;;  %v284_v51 = vrot.slane %v2347_v43, 1  ;;  %v2387_v58 = vld [vmem:[%s2255_s25 + $0x78] sm:$0xff]  ;;  %v1748_v61 = vld [vmem:[%s3279_s1 + $0x150] sm:$0xff]  ;;  %s2046_s17 = sshra.s32 %s1607_s7, 4  ;;  %s2047_s17 = int_to_ptr.hbm [resolvable:$true] %s2046_s17 }
  0x24   : > { %1930 = vmatpush.msra.mxu3 %v1731_v6  ;;  %330 = vmatpush.msra.mxu0 %v1731_v6  ;;  %v222_v52 = vld [vmem:[%s3279_s1 + $0x60] sm:$0xff]  ;;  %v275_v53 = vsel %vm250_vm0, %v2290_v23, %v274_v42  ;;  %v265_v54 = vsel %vm250_vm0, %v2286_v21, %v264_v46  ;;  %v2398_v62 = vld [vmem:[%s2255_s25 + $0x48] sm:$0xff]  ;;  %v2401_v63 = vld [vmem:[%s2255_s25 + $0x50] sm:$0xff]  ;;  %v276_v5 = vrot.slane %v2387_v58, 1  ;;  %s2048_s18 = scalar_lea.hbm %s2047_s17, 128  ;;  %p2053_p2 = scmp.lt.s32.totalorder %s2047_s17, %s3280_s2 }
  0x25   : > { %1931 = vmatpush.msra.mxu1 %v1730_v7  ;;  %1932 = vmatpush.msra.mxu2 %v1730_v7  ;;  %v1792_v56 = vld [vmem:[%s3279_s1 + $0x1e0] sm:$0xff]  ;;  %v285_v60 = vsel %vm250_vm0, %v2297_v26, %v284_v51  ;;  %v1791_v0 = vld [vmem:[%s3279_s1 + $0x1d8] sm:$0xff]  ;;  %v220_v2 = vld [vmem:[%s3279_s1 + $0x50] sm:$0xff]  ;;  %p2049_p13 = scmp.ne.s32.totalorder %s2047_s17, %s2048_s18 }
  0x26   : > { %1933 = vmatpush.msra.mxu3 %v1730_v7  ;;  %331 = vmatpush.msra.mxu0 %v1730_v7  ;;  %v2390_v59 = vld [vmem:[%s2255_s25 + $0x80] sm:$0xff]  ;;  %v1811_v1 = vld [vmem:[%s3279_s1 + $0x278] sm:$0xff]  ;;  %v1747_v3 = vld [vmem:[%s3279_s1 + $0x148] sm:$0xff] }
  0x27   : > { %1934 = vmatpush.msra.mxu1 %v1729_v8  ;;  %1935 = vmatpush.msra.mxu2 %v1729_v8  ;;  %v1790_v4 = vld [vmem:[%s3279_s1 + $0x1d0] sm:$0xff]  ;;  %v2420_v6 = vrot.slane %v2390_v59, 1  ;;  %v1746_v20 = vld [vmem:[%s3279_s1 + $0x140] sm:$0xff]  ;;  %v1789_v22 = vld [vmem:[%s3279_s1 + $0x1c8] sm:$0xff]  ;;  %p2050_p0 = pnand %p2049_p13, %p2196_p3 }
  0x28   : > { %1936 = vmatpush.msra.mxu3 %v1729_v8  ;;  %332 = vmatpush.msra.mxu0 %v1729_v8  ;;  %v2423_v7 = vld [vmem:[%s2255_s25 + $0x10] sm:$0x3]  ;;  %v1808_v42 = vld [vmem:[%s3279_s1 + $0x260] sm:$0xff]  ;;  %v2483_v46 = vld [vmem:[%s2255_s25 + $0x88] sm:$0x3] }
  0x29   : > { %1937 = vmatpush.msra.mxu1 %v1728_v9  ;;  %1938 = vmatpush.msra.mxu2 %v1728_v9  ;;  %v1810_v8 = vld [vmem:[%s3279_s1 + $0x270] sm:$0xff]  ;;  %v254_v25 = vrot.slane %v2423_v7, 1  ;;  %p2051_p1 = pneg %p2050_p0 }
  0x2a   : > { %1939 = vmatpush.msra.mxu3 %v1728_v9  ;;  %333 = vmatpush.msra.mxu0 %v1728_v9  ;;  %v266_v9 = vrot.slane %v2398_v62, 1  ;;  %v216_v51 = vld [vmem:[%s3279_s1 + $0x30] sm:$0xff] }
  0x2b   : > { %1940 = vmatpush.msra.mxu1 %v1727_v10  ;;  %1941 = vmatpush.msra.mxu2 %v1727_v10 }
  0x2c   : > { %1942 = vmatpush.msra.mxu3 %v1727_v10  ;;  %334 = vmatpush.msra.mxu0 %v1727_v10  ;;  %v2430_v10 = vrot.slane %v2401_v63, 1 }
  0x2d   : > { %1943 = vmatpush.msra.mxu1 %v1726_v11  ;;  %1944 = vmatpush.msra.mxu2 %v1726_v11 }
  0x2e   : > { %1945 = vmatpush.msra.mxu3 %v1726_v11  ;;  %335 = vmatpush.msra.mxu0 %v1726_v11  ;;  %v2433_v11 = vld [vmem:[%s2255_s25 + $0xa8] sm:$0xff] }
  0x2f   : > { %1946 = vmatpush.msra.mxu1 %v1725_v12  ;;  %1947 = vmatpush.msra.mxu2 %v1725_v12 }
  0x30   : > { %1948 = vmatpush.msra.mxu3 %v1725_v12  ;;  %336 = vmatpush.msra.mxu0 %v1725_v12  ;;  %v2436_v12 = vld [vmem:[%s2255_s25 + $0xb0] sm:$0xff] }
  0x31   : > { %1949 = vmatpush.msra.mxu1 %v1724_v17  ;;  %1950 = vmatpush.msra.mxu2 %v1724_v17  ;;  %v2460_v37 = vrot.slane %v2436_v12, 1 }
  0x32   : > { %1951 = vmatpush.msra.mxu3 %v1724_v17  ;;  %337 = vmatpush.msra.mxu0 %v1724_v17  ;;  %v219_v17 = vld [vmem:[%s3279_s1 + $0x48] sm:$0xff] }
  0x33   : > { %1952 = vmatpush.msra.mxu1 %v1723_v24  ;;  %1953 = vmatpush.msra.mxu2 %v1723_v24 }
  0x34   : > { %1954 = vmatpush.msra.mxu3 %v1723_v24  ;;  %338 = vmatpush.msra.mxu0 %v1723_v24  ;;  %v1809_v24 = vld [vmem:[%s3279_s1 + $0x268] sm:$0xff] }
  0x35   : > { %1955 = vmatpush.msra.mxu1 %v1722_v27  ;;  %1956 = vmatpush.msra.mxu2 %v1722_v27 }
  0x36   : > { %352 = vmatmul.f32.vlgmr.msra.gmra.mxu1 %v2310_v30  ;;  %364 = vmatmul.f32.vlgmr.msra.gmra.mxu2 %v2314_v31 }
  0x37   : > { %528 = vmatpush.msrb.mxu2 %v1753_v32  ;;  %1957 = vmatpush.msra.mxu3 %v1722_v27  ;;  %v2456_v32 = vsel %vm250_vm0, %v276_v5, %v2420_v6 }
  0x38   : > { %389 = vmatpush.msrb.mxu1 %v225_v34  ;;  %376 = vmatmul.f32.vlgmr.msra.gmra.mxu3 %v2327_v35  ;;  %v286_v34 = vrot.slane %v2433_v11, 1 }
  0x39   : > { %529 = vmatpush.msrb.mxu2 %v1752_v39  ;;  %653 = vmatpush.msrb.mxu3 %v1795_v40  ;;  %v2464_v39 = vsel %vm250_vm0, %v266_v9, %v2430_v10  ;;  %v1745_v40 = vld [vmem:[%s3279_s1 + $0x138] sm:$0xff] }
  0x3a   : > { %390 = vmatpush.msrb.mxu1 %v224_v41  ;;  %339 = vmatpush.msra.mxu0 %v1722_v27  ;;  %v218_v27 = vld [vmem:[%s3279_s1 + $0x40] sm:$0xff] }
  0x3b   : > { %530 = vmatpush.msrb.mxu2 %v1751_v44  ;;  %654 = vmatpush.msrb.mxu3 %v1794_v45  ;;  %v1788_v41 = vld [vmem:[%s3279_s1 + $0x1c0] sm:$0xff]  ;;  %v217_v44 = vld [vmem:[%s3279_s1 + $0x38] sm:$0xff]  ;;  %v255_v45 = vsel %vm250_vm0, %v252_v38, %v254_v25 }
  0x3c   : > { %391 = vmatpush.msrb.mxu1 %v223_v47  ;;  %340 = vmatmul.f32.vlgmr.msra.gmra.mxu0 %v253_v48  ;;  %v2488_v47 = vsel %vm250_vm0, %v286_v34, %v2460_v37  ;;  %v1744_v48 = vld [vmem:[%s3279_s1 + $0x130] sm:$0xff]  ;;  %v1787_v38 = vld [vmem:[%s3279_s1 + $0x1b8] sm:$0xff]  ;;  %v1804_v25 = vld [vmem:[%s3279_s1 + $0x240] sm:$0xff] }
  0x3d   : > { %531 = vmatpush.msrb.mxu2 %v1750_v49  ;;  %655 = vmatpush.msrb.mxu3 %v1793_v50  ;;  %v2494_v49 = vld [vmem:[%s2255_s25 + $0x58] sm:$0x3] }
  0x3e   : > { %392 = vmatpush.msrb.mxu1 %v222_v52  ;;  %367 = vmatmul.f32.gmra.mxu2 %v275_v53  ;;  %v1807_v50 = vld [vmem:[%s3279_s1 + $0x258] sm:$0xff]  ;;  %v1743_v52 = vld [vmem:[%s3279_s1 + $0x128] sm:$0xff]  ;;  %v279_v53 = vrot.slane %v2483_v46, 1 }
  0x3f   : > { %355 = vmatmul.f32.gmra.mxu1 %v265_v54  ;;  %532 = vmatpush.msrb.mxu2 %v1749_v55  ;;  %v2510_v54 = vld [vmem:[%s2255_s25 + $0x18] sm:$0xff]  ;;  %v2513_v55 = vld [vmem:[%s2255_s25 + $0x20] sm:$0xff] }
  0x40   : > { %656 = vmatpush.msrb.mxu3 %v1792_v56  ;;  %393 = vmatpush.msrb.mxu1 %v221_v57  ;;  %v1786_v56 = vld [vmem:[%s3279_s1 + $0x1b0] sm:$0xff]  ;;  %v2540_v5 = vrot.slane %v2513_v55, 1  ;;  %v280_v9 = vsel %vm250_vm0, %v2420_v6, %v279_v53 }
  0x41   : > { %379 = vmatmul.f32.gmra.mxu3 %v285_v60  ;;  %533 = vmatpush.msrb.mxu2 %v1748_v61  ;;  %v1806_v57 = vld [vmem:[%s3279_s1 + $0x250] sm:$0xff]  ;;  %v269_v60 = vrot.slane %v2494_v49, 1  ;;  %v2524_v61 = vld [vmem:[%s2255_s25 + $0xb8] sm:$0x3] }
  0x42   : > { %657 = vmatpush.msrb.mxu3 %v1791_v0  ;;  %831 = vmatpush.msrb.mxu0 %v1811_v1  ;;  %v215_v0 = vld [vmem:[%s3279_s1 + $0x28] sm:$0xff]  ;;  %v1742_v1 = vld [vmem:[%s3279_s1 + $0x120] sm:$0xff]  ;;  %v1802_v53 = vld [vmem:[%s3279_s1 + $0x230] sm:$0xff] }
  0x43   : > { %394 = vmatpush.msrb.mxu1 %v220_v2  ;;  %534 = vmatpush.msrb.mxu2 %v1747_v3  ;;  %v1785_v2 = vld [vmem:[%s3279_s1 + $0x1a8] sm:$0xff] }
  0x44   : > { %658 = vmatpush.msrb.mxu3 %v1790_v4  ;;  %832 = vmatpush.msrb.mxu0 %v1810_v8  ;;  %v1805_v3 = vld [vmem:[%s3279_s1 + $0x248] sm:$0xff]  ;;  %v256_v4 = vrot.slane %v2510_v54, 1  ;;  %v214_v8 = vld [vmem:[%s3279_s1 + $0x20] sm:$0xff] }
  0x45   : > { %395 = vmatpush.msrb.mxu1 %v219_v17  ;;  %535 = vmatpush.msrb.mxu2 %v1746_v20  ;;  %v289_v17 = vrot.slane %v2524_v61, 1  ;;  %v270_v20 = vsel %vm250_vm0, %v2430_v10, %v269_v60  ;;  %v1781_v60 = vld [vmem:[%s3279_s1 + $0x188] sm:$0xff] }
  0x46   : > { %659 = vmatpush.msrb.mxu3 %v1789_v22  ;;  %833 = vmatpush.msrb.mxu0 %v1809_v24  ;;  %v1741_v22 = vld [vmem:[%s3279_s1 + $0x118] sm:$0xff]  ;;  %v1784_v24 = vld [vmem:[%s3279_s1 + $0x1a0] sm:$0xff]  ;;  %v2564_v34 = vsel %vm250_vm0, %v256_v4, %v2540_v5 }
  0x47   : > { %396 = vmatpush.msrb.mxu1 %v218_v27  ;;  %370 = vmatmul.f32.gmra.mxu2 %v2456_v32  ;;  %v213_v27 = vld [vmem:[%s3279_s1 + $0x18] sm:$0xff]  ;;  %v1780_v4 = vld [vmem:[%s3279_s1 + $0x180] sm:$0xff] }
  0x48   : > { %358 = vmatmul.f32.gmra.mxu1 %v2464_v39  ;;  %536 = vmatpush.msrb.mxu2 %v1745_v40  ;;  %v290_v40 = vsel %vm250_vm0, %v2460_v37, %v289_v17 }
  0x49   : > { %660 = vmatpush.msrb.mxu3 %v1788_v41  ;;  %834 = vmatpush.msrb.mxu0 %v1808_v42  ;;  %v1740_v41 = vld [vmem:[%s3279_s1 + $0x110] sm:$0xff]  ;;  %v1783_v42 = vld [vmem:[%s3279_s1 + $0x198] sm:$0xff] }
  0x4a   : > { %397 = vmatpush.msrb.mxu1 %v217_v44  ;;  %343 = vmatmul.f32.gmra.mxu0 %v255_v45  ;;  %v1803_v44 = vld [vmem:[%s3279_s1 + $0x238] sm:$0xff]  ;;  %v212_v45 = vld [vmem:[%s3279_s1 + $0x10] sm:$0xff] }
  0x4b   : > { %382 = vmatmul.f32.gmra.mxu3 %v2488_v47  ;;  %537 = vmatpush.msrb.mxu2 %v1744_v48  ;;  %v1739_v48 = vld [vmem:[%s3279_s1 + $0x108] sm:$0xff] }
  0x4c   : > { %661 = vmatpush.msrb.mxu3 %v1787_v38  ;;  %835 = vmatpush.msrb.mxu0 %v1807_v50  ;;  %v455_v38 = vrot.slane %v2303_v28, 2  ;;  %v456_v50 = vrot.slane %v2306_v29, 2 }
  0x4d   : > { %398 = vmatpush.msrb.mxu1 %v216_v51  ;;  %538 = vmatpush.msrb.mxu2 %v1743_v52  ;;  %v2587_v51 = vld [vmem:[%s2255_s25 + $0x28] sm:$0x3]  ;;  %v1782_v52 = vld [vmem:[%s3279_s1 + $0x190] sm:$0xff] }
  0x4e   : > { %662 = vmatpush.msrb.mxu3 %v1786_v56  ;;  %836 = vmatpush.msrb.mxu0 %v1806_v57  ;;  %v211_v56 = vld [vmem:[%s3279_s1 + $0x8] sm:$0xff]  ;;  %v1738_v57 = vld [vmem:[%s3279_s1 + $0x100] sm:$0xff] }
  0x4f   : > { %399 = vmatpush.msrb.mxu1 %v215_v0  ;;  %539 = vmatpush.msrb.mxu2 %v1742_v1  ;;  %v1801_v0 = vld [vmem:[%s3279_s1 + $0x228] sm:$0xff]  ;;  %v259_v1 = vrot.slane %v2587_v51, 1 }
  0x50   : > { %663 = vmatpush.msrb.mxu3 %v1785_v2  ;;  %837 = vmatpush.msrb.mxu0 %v1805_v3  ;;  %v210_v2 = vld [vmem:[%s3279_s1] sm:$0xff]  ;;  %v457_v3 = vsel %vm454_vm1, %v455_v38, %v456_v50  ;;  %v1825_v38 = vld [vmem:[%s3279_s1 + $0x2e8] sm:$0xff] }
  0x51   : > { %400 = vmatpush.msrb.mxu1 %v214_v8  ;;  %373 = vmatmul.f32.gmra.mxu2 %v280_v9  ;;  %v1800_v8 = vld [vmem:[%s3279_s1 + $0x220] sm:$0xff]  ;;  %v1869_v9 = vld [vmem:[%s3279_s1 + $0x378] sm:$0xff]  ;;  %v260_v17 = vsel %vm250_vm0, %v2540_v5, %v259_v1 }
  0x52   : > { %361 = vmatmul.f32.gmra.mxu1 %v270_v20  ;;  %540 = vmatpush.msrb.mxu2 %v1741_v22  ;;  %v1799_v20 = vld [vmem:[%s3279_s1 + $0x218] sm:$0xff] }
  0x53   : > { %664 = vmatpush.msrb.mxu3 %v1784_v24  ;;  %838 = vmatpush.msrb.mxu0 %v1804_v25  ;;  %v1885_v22 = vld [vmem:[%s3279_s1 + $0x3f8] sm:$0xff]  ;;  %v458_v24 = vrot.slane %v2423_v7, 2  ;;  %v1884_v7 = vld [vmem:[%s3279_s1 + $0x3f0] sm:$0xff] }
  0x54   : > { %401 = vmatpush.msrb.mxu1 %v213_v27  ;;  %346 = vmatmul.f32.gmra.mxu0 %v2564_v34  ;;  %v1827_v25 = vld [vmem:[%s3279_s1 + $0x2f8] sm:$0xff]  ;;  %v1798_v27 = vld [vmem:[%s3279_s1 + $0x210] sm:$0xff] }
  0x55   : > { %385 = vmatmul.f32.gmra.mxu3 %v290_v40  ;;  %541 = vmatpush.msrb.mxu2 %v1740_v41  ;;  %v1826_v40 = vld [vmem:[%s3279_s1 + $0x2f0] sm:$0xff]  ;;  %v1867_v41 = vld [vmem:[%s3279_s1 + $0x368] sm:$0xff]  ;;  %v1865_v1 = vld [vmem:[%s3279_s1 + $0x358] sm:$0xff] }
  0x56   : > { %665 = vmatpush.msrb.mxu3 %v1783_v42  ;;  %839 = vmatpush.msrb.mxu0 %v1803_v44  ;;  %v1797_v42 = vld [vmem:[%s3279_s1 + $0x208] sm:$0xff]  ;;  %v459_v44 = vsel %vm454_vm1, %v456_v50, %v458_v24  ;;  %v912_v50 = vrot.slane %v2510_v54, 2  ;;  %v463_v24 = vrot.slane %v2587_v51, 2  ;;  %v1896_v51 = vld [vmem:[%s3279_s1 + $0x450] sm:$0xff] }
  0x57   : > { %402 = vmatpush.msrb.mxu1 %v212_v45  ;;  %542 = vmatpush.msrb.mxu2 %v1739_v48  ;;  %v1883_v45 = vld [vmem:[%s3279_s1 + $0x3e8] sm:$0xff]  ;;  %v1796_v48 = vld [vmem:[%s3279_s1 + $0x200] sm:$0xff] }
  0x58   : > { %666 = vmatpush.msrb.mxu3 %v1782_v52  ;;  %840 = vmatpush.msrb.mxu0 %v1802_v53  ;;  %v2666_v52 = vrot.slane %v2513_v55, 2  ;;  %v1901_v53 = vld [vmem:[%s3279_s1 + $0x478] sm:$0xff] }
  0x59   : > { %403 = vmatpush.msrb.mxu1 %v211_v56  ;;  %543 = vmatpush.msrb.mxu2 %v1738_v57  ;;  %v2672_v56 = vld [vmem:[%s2255_s25 + $0x28] sm:$0x3]  ;;  %v1866_v57 = vld [vmem:[%s3279_s1 + $0x360] sm:$0xff] }
  0x5a   : > { %667 = vmatpush.msrb.mxu3 %v1781_v60  ;;  %841 = vmatpush.msrb.mxu0 %v1801_v0  ;;  %v1824_v60 = vld [vmem:[%s3279_s1 + $0x2e0] sm:$0xff]  ;;  %v1900_v0 = vld [vmem:[%s3279_s1 + $0x470] sm:$0xff] }
  0x5b   : > { %404 = vmatpush.msrb.mxu1 %v210_v2  ;;  %544 = vmatmul.f32.vlgmr.msrb.gmra.mxu2 %v457_v3  ;;  %v761_v2 = vrot.slane %v2672_v56, 1  ;;  %v1881_v3 = vld [vmem:[%s3279_s1 + $0x3d8] sm:$0xff] }
  0x5c   : > { %405 = vmatmul.f32.vlgmr.msrb.gmra.mxu1 %v2303_v28  ;;  %668 = vmatpush.msrb.mxu3 %v1780_v4  ;;  %v1868_v28 = vld [vmem:[%s3279_s1 + $0x370] sm:$0xff]  ;;  %v2700_v4 = vsel %vm454_vm1, %v912_v50, %v2666_v52 }
  0x5d   : > { %842 = vmatpush.msrb.mxu0 %v1800_v8  ;;  %1110 = vmatpush.msra.mxu2 %v1869_v9  ;;  %v1899_v8 = vld [vmem:[%s3279_s1 + $0x468] sm:$0xff]  ;;  %v1864_v9 = vld [vmem:[%s3279_s1 + $0x350] sm:$0xff] }
  0x5e   : > { %349 = vmatmul.f32.gmra.mxu0 %v260_v17  ;;  %669 = vmatmul.f32.vlgmr.msrb.gmra.mxu3 %v2510_v54  ;;  %v1898_v17 = vld [vmem:[%s3279_s1 + $0x460] sm:$0xff] }
  0x5f   : > { %843 = vmatpush.msrb.mxu0 %v1799_v20  ;;  %1288 = vmatpush.msra.mxu3 %v1885_v22  ;;  %v1880_v20 = vld [vmem:[%s3279_s1 + $0x3d0] sm:$0xff]  ;;  %v762_v22 = vsel %vm250_vm0, %v2540_v5, %v761_v2  ;;  %v1863_v5 = vld [vmem:[%s3279_s1 + $0x348] sm:$0xff] }
  0x60   : > { %985 = vmatpush.msra.mxu1 %v1827_v25  ;;  %1111 = vmatpush.msra.mxu2 %v1868_v28  ;;  %v1897_v25 = vld [vmem:[%s3279_s1 + $0x458] sm:$0xff]  ;;  %v1822_v28 = vld [vmem:[%s3279_s1 + $0x2d0] sm:$0xff] }
  0x61   : > { %844 = vmatpush.msrb.mxu0 %v1798_v27  ;;  %1289 = vmatpush.msra.mxu3 %v1884_v7  ;;  %v1821_v27 = vld [vmem:[%s3279_s1 + $0x2c8] sm:$0xff]  ;;  %v464_v7 = vsel %vm454_vm1, %v2666_v52, %v463_v24  ;;  %v1860_v2 = vld [vmem:[%s3279_s1 + $0x330] sm:$0xff] }
  0x62   : > { %986 = vmatpush.msra.mxu1 %v1826_v40  ;;  %1112 = vmatpush.msra.mxu2 %v1867_v41  ;;  %v917_v40 = vrot.slane %v2264_v13, 2  ;;  %v2743_v41 = vrot.slane %v2267_v14, 2  ;;  %v1875_v24 = vld [vmem:[%s3279_s1 + $0x3a8] sm:$0xff] }
  0x63   : > { %845 = vmatpush.msrb.mxu0 %v1797_v42  ;;  %547 = vmatmul.f32.gmra.mxu2 %v459_v44  ;;  %v2746_v42 = vld [vmem:[%s2255_s25 + $0x40] sm:$0x3] }
  0x64   : > { %408 = vmatmul.f32.gmra.mxu1 %v2306_v29  ;;  %1290 = vmatpush.msra.mxu3 %v1883_v45  ;;  %v1882_v29 = vld [vmem:[%s3279_s1 + $0x3e0] sm:$0xff]  ;;  %v2765_v50 = vsel %vm454_vm1, %v917_v40, %v2743_v41  ;;  %v1891_v40 = vld [vmem:[%s3279_s1 + $0x428] sm:$0xff] }
  0x65   : > { %846 = vmatpush.msrb.mxu0 %v1796_v48  ;;  %987 = vmatpush.msra.mxu1 %v1825_v38  ;;  %v1862_v44 = vld [vmem:[%s3279_s1 + $0x340] sm:$0xff]  ;;  %v766_v38 = vrot.slane %v2746_v42, 1 }
  0x66   : > { %672 = vmatmul.f32.gmra.mxu3 %v2513_v55  ;;  %847 = vmatmul.f32.vlgmr.msrb.gmra.mxu0 %v2564_v34  ;;  %v1823_v34 = vld [vmem:[%s3279_s1 + $0x2d8] sm:$0xff]  ;;  %v1878_v45 = vld [vmem:[%s3279_s1 + $0x3c0] sm:$0xff] }
  0x67   : > { %1442 = vmatpush.msra.mxu0 %v1901_v53  ;;  %1113 = vmatpush.msra.mxu2 %v1866_v57  ;;  %v1820_v48 = vld [vmem:[%s3279_s1 + $0x2c0] sm:$0xff]  ;;  %v468_v53 = vrot.slane %v2330_v36, 2  ;;  %v1861_v57 = vld [vmem:[%s3279_s1 + $0x338] sm:$0xff] }
  0x68   : > { %1291 = vmatpush.msra.mxu3 %v1882_v29  ;;  %988 = vmatpush.msra.mxu1 %v1824_v60  ;;  %v1877_v29 = vld [vmem:[%s3279_s1 + $0x3b8] sm:$0xff]  ;;  %v922_v60 = vrot.slane %v2398_v62, 2 }
  0x69   : > { %1443 = vmatpush.msra.mxu0 %v1900_v0  ;;  %1114 = vmatpush.msra.mxu2 %v1865_v1  ;;  %v469_v36 = vsel %vm454_vm1, %v2743_v41, %v468_v53  ;;  %v2790_v0 = vrot.slane %v2401_v63, 2  ;;  %v2793_v1 = vld [vmem:[%s2255_s25 + $0x58] sm:$0x3]  ;;  %v932_v53 = vrot.slane %v2387_v58, 2 }
  0x6a   : > { %1292 = vmatpush.msra.mxu3 %v1881_v3  ;;  %989 = vmatpush.msra.mxu1 %v1823_v34  ;;  %v1876_v3 = vld [vmem:[%s3279_s1 + $0x3b0] sm:$0xff] }
  0x6b   : > { %550 = vmatmul.f32.gmra.mxu2 %v2700_v4  ;;  %1444 = vmatpush.msra.mxu0 %v1899_v8  ;;  %v1818_v34 = vld [vmem:[%s3279_s1 + $0x2b0] sm:$0xff]  ;;  %v771_v8 = vrot.slane %v2793_v1, 1 }
  0x6c   : > { %411 = vmatmul.f32.gmra.mxu1 %v2510_v54  ;;  %1115 = vmatpush.msra.mxu2 %v1864_v9  ;;  %v1879_v54 = vld [vmem:[%s3279_s1 + $0x3c8] sm:$0xff]  ;;  %v2812_v9 = vsel %vm454_vm1, %v922_v60, %v2790_v0 }
  0x6d   : > { %1445 = vmatpush.msra.mxu0 %v1898_v17  ;;  %1293 = vmatpush.msra.mxu3 %v1880_v20  ;;  %v772_v17 = vsel %vm250_vm0, %v2430_v10, %v771_v8  ;;  %v473_v20 = vrot.slane %v2494_v49, 2  ;;  %v1817_v49 = vld [vmem:[%s3279_s1 + $0x2a8] sm:$0xff] }
  0x6e   : > { %675 = vmatmul.f32.gmra.mxu3 %v2264_v13  ;;  %850 = vmatmul.f32.gmra.mxu0 %v762_v22  ;;  %v1859_v22 = vld [vmem:[%s3279_s1 + $0x328] sm:$0xff] }
  0x6f   : > { %1446 = vmatpush.msra.mxu0 %v1897_v25  ;;  %990 = vmatpush.msra.mxu1 %v1822_v28  ;;  %v1892_v25 = vld [vmem:[%s3279_s1 + $0x430] sm:$0xff]  ;;  %v474_v28 = vsel %vm454_vm1, %v2790_v0, %v473_v20  ;;  %v2933_v20 = vrot.slane %v2282_v19, 2 }
  0x70   : > { %1116 = vmatpush.msra.mxu2 %v1863_v5  ;;  %1294 = vmatpush.msra.mxu3 %v1879_v54  ;;  %v927_v5 = vrot.slane %v2270_v15, 2  ;;  %v2837_v54 = vrot.slane %v2273_v16, 2 }
  0x71   : > { %1447 = vmatpush.msra.mxu0 %v1896_v51  ;;  %991 = vmatpush.msra.mxu1 %v1821_v27  ;;  %v2840_v51 = vld [vmem:[%s2255_s25 + $0x70] sm:$0x3]  ;;  %v1858_v27 = vld [vmem:[%s3279_s1 + $0x320] sm:$0xff] }
  0x72   : > { %1117 = vmatpush.msra.mxu2 %v1862_v44  ;;  %1295 = vmatpush.msra.mxu3 %v1878_v45  ;;  %v1816_v44 = vld [vmem:[%s3279_s1 + $0x2a0] sm:$0xff]  ;;  %v776_v45 = vrot.slane %v2840_v51, 1 }
  0x73   : > { %553 = vmatmul.f32.gmra.mxu2 %v464_v7  ;;  %992 = vmatpush.msra.mxu1 %v1820_v48  ;;  %v1874_v7 = vld [vmem:[%s3279_s1 + $0x3a0] sm:$0xff]  ;;  %v478_v48 = vrot.slane %v2320_v33, 2 }
  0x74   : > { %414 = vmatmul.f32.gmra.mxu1 %v2513_v55  ;;  %v1895_v55 = vld [vmem:[%s3279_s1 + $0x448] sm:$0xff]  ;;  %1118 = vmatpush.msra.mxu2 %v1861_v57  ;;  %v2884_v57 = vrot.slane %v2390_v59, 2 }
  0x75   : > { %1448 = vmatpush.msra.mxu0 %v1895_v55  ;;  %1296 = vmatpush.msra.mxu3 %v1877_v29  ;;  %v2859_v55 = vsel %vm454_vm1, %v927_v5, %v2837_v54  ;;  %v479_v33 = vsel %vm454_vm1, %v2837_v54, %v478_v48  ;;  %v2887_v29 = vld [vmem:[%s2255_s25 + $0x88] sm:$0x3] }
  0x76   : > { %678 = vmatmul.f32.gmra.mxu3 %v2267_v14  ;;  %853 = vmatmul.f32.gmra.mxu0 %v2310_v30  ;;  %v767_v30 = vsel %vm250_vm0, %v2286_v21, %v766_v38  ;;  %v1894_v21 = vld [vmem:[%s3279_s1 + $0x440] sm:$0xff]  ;;  %v1857_v38 = vld [vmem:[%s3279_s1 + $0x318] sm:$0xff]  ;;  %v781_v60 = vrot.slane %v2887_v29, 1 }
  0x77   : > { %1449 = vmatpush.msra.mxu0 %v1894_v21  ;;  %1119 = vmatpush.msra.mxu2 %v1860_v2  ;;  %v1856_v21 = vld [vmem:[%s3279_s1 + $0x310] sm:$0xff]  ;;  %v2906_v2 = vsel %vm454_vm1, %v932_v53, %v2884_v57 }
  0x78   : > { %1297 = vmatpush.msra.mxu3 %v1876_v3  ;;  %v483_v3 = vrot.slane %v2483_v46, 2 }
  0x79   : > { %1120 = vmatpush.msra.mxu2 %v1859_v22  ;;  %v2936_v22 = vld [vmem:[%s2255_s25 + $0xa0] sm:$0x3] }
  0x7a   : > { %1298 = vmatpush.msra.mxu3 %v1875_v24  ;;  %v484_v46 = vsel %vm454_vm1, %v2884_v57, %v483_v3  ;;  %v1854_v24 = vld [vmem:[%s3279_s1 + $0x300] sm:$0xff] }
  0x7b   : > { %556 = vmatmul.f32.gmra.mxu2 %v2765_v50 }
  0x7c   : > { %417 = vmatmul.f32.gmra.mxu1 %v2264_v13  ;;  %v1819_v13 = vld [vmem:[%s3279_s1 + $0x2b8] sm:$0xff]  ;;  %1121 = vmatpush.msra.mxu2 %v1858_v27 }
  0x7d   : > { %993 = vmatpush.msra.mxu1 %v1819_v13  ;;  %1299 = vmatpush.msra.mxu3 %v1874_v7  ;;  %v1872_v13 = vld [vmem:[%s3279_s1 + $0x390] sm:$0xff] }
  0x7e   : > { %681 = vmatmul.f32.gmra.mxu3 %v2398_v62  ;;  %856 = vmatmul.f32.gmra.mxu0 %v767_v30  ;;  %v1873_v30 = vld [vmem:[%s3279_s1 + $0x398] sm:$0xff] }
  0x7f   : > { %994 = vmatpush.msra.mxu1 %v1818_v34  ;;  %1122 = vmatpush.msra.mxu2 %v1857_v38  ;;  %v1871_v34 = vld [vmem:[%s3279_s1 + $0x388] sm:$0xff] }
  0x80   : > { %1300 = vmatpush.msra.mxu3 %v1873_v30  ;;  %v2984_v30 = vld [vmem:[%s2255_s25 + $0xb8] sm:$0x3] }
  0x81   : > { %995 = vmatpush.msra.mxu1 %v1817_v49  ;;  %1123 = vmatpush.msra.mxu2 %v1856_v21  ;;  %v1812_v49 = vld [vmem:[%s3279_s1 + $0x280] sm:$0xff] }
  0x82   : > { %1301 = vmatpush.msra.mxu3 %v1872_v13  ;;  %v2999_v21 = vld [vmem:[%s2255_s25 + $0xc0] sm:$0xff] }
  0x83   : > { %559 = vmatmul.f32.gmra.mxu2 %v469_v36  ;;  %996 = vmatpush.msra.mxu1 %v1816_v44  ;;  %v1814_v36 = vld [vmem:[%s3279_s1 + $0x290] sm:$0xff]  ;;  %v488_v44 = vrot.slane %v2347_v43, 2  ;;  %v2979_v43 = vrot.slane %v2436_v12, 2 }
  0x84   : > { %420 = vmatmul.f32.gmra.mxu1 %v2267_v14  ;;  %v1893_v14 = vld [vmem:[%s3279_s1 + $0x438] sm:$0xff]  ;;  %1302 = vmatpush.msra.mxu3 %v1871_v34  ;;  %v1830_v34 = vld [vmem:[%s2255_s25 + $0x30] sm:$0xff] }
  0x85   : > { %1450 = vmatpush.msra.mxu0 %v1893_v14  ;;  %v1855_v14 = vld [vmem:[%s3279_s1 + $0x308] sm:$0xff] }
  0x86   : > { %684 = vmatmul.f32.gmra.mxu3 %v2401_v63  ;;  %859 = vmatmul.f32.gmra.mxu0 %v2464_v39 }
  0x87   : > { %1451 = vmatpush.msra.mxu0 %v1892_v25  ;;  %1124 = vmatpush.msra.mxu2 %v1855_v14  ;;  %v1870_v25 = vld [vmem:[%s3279_s1 + $0x380] sm:$0xff] }
  0x88   : > { %1303 = vmatpush.msra.mxu3 %v1870_v25 }
  0x89   : > { %1452 = vmatpush.msra.mxu0 %v1891_v40  ;;  %1125 = vmatpush.msra.mxu2 %v1854_v24 }
  0x8b   : > { %562 = vmatmul.f32.gmra.mxu2 %v2812_v9 }
  0x8c   : > { %423 = vmatmul.f32.gmra.mxu1 %v2398_v62 }
  0x8e   : > { %687 = vmatmul.f32.gmra.mxu3 %v2270_v15  ;;  %862 = vmatmul.f32.gmra.mxu0 %v772_v17  ;;  %v937_v17 = vrot.slane %v2279_v18, 2 }
  0x90   : > { %v2955_v5 = vsel %vm454_vm1, %v937_v17, %v2933_v20 }
  0x93   : > { %565 = vmatmul.f32.gmra.mxu2 %v474_v28  ;;  %v786_v28 = vrot.slane %v2936_v22, 1 }
  0x94   : > { %426 = vmatmul.f32.gmra.mxu1 %v2401_v63 }
  0x95   : > { %v787_v27 = vsel %vm250_vm0, %v2297_v26, %v786_v28  ;;  %v489_v26 = vsel %vm454_vm1, %v2933_v20, %v488_v44 }
  0x96   : > { %690 = vmatmul.f32.gmra.mxu3 %v2273_v16  ;;  %865 = vmatmul.f32.gmra.mxu0 %v2314_v31  ;;  %v777_v31 = vsel %vm250_vm0, %v2290_v23, %v776_v45  ;;  %v1890_v23 = vld [vmem:[%s3279_s1 + $0x420] sm:$0xff] }
  0x97   : > { %1453 = vmatpush.msra.mxu0 %v1890_v23 }
  0x9b   : > { %568 = vmatmul.f32.gmra.mxu2 %v2859_v55 }
  0x9c   : > { %429 = vmatmul.f32.gmra.mxu1 %v2270_v15  ;;  %v1815_v15 = vld [vmem:[%s3279_s1 + $0x298] sm:$0xff] }
  0x9d   : > { %997 = vmatpush.msra.mxu1 %v1815_v15 }
  0x9e   : > { %693 = vmatmul.f32.gmra.mxu3 %v2387_v58  ;;  %868 = vmatmul.f32.gmra.mxu0 %v777_v31  ;;  %v1886_v31 = vld [vmem:[%s3279_s1 + $0x400] sm:$0xff] }
  0x9f   : > { %998 = vmatpush.msra.mxu1 %v1814_v36 }
  0xa3   : > { %571 = vmatmul.f32.gmra.mxu2 %v479_v33  ;;  %v791_v33 = vrot.slane %v2984_v30, 1 }
  0xa4   : > { %432 = vmatmul.f32.gmra.mxu1 %v2273_v16  ;;  %v1889_v16 = vld [vmem:[%s3279_s1 + $0x418] sm:$0xff] }
  0xa5   : > { %1454 = vmatpush.msra.mxu0 %v1889_v16  ;;  %v792_v13 = vsel %vm250_vm0, %v2460_v37, %v791_v33  ;;  %v3006_v16 = vld [vmem:[%s2255_s25 + $0xc8] sm:$0xff] }
  0xa6   : > { %696 = vmatmul.f32.gmra.mxu3 %v2390_v59  ;;  %871 = vmatmul.f32.gmra.mxu0 %v2456_v32  ;;  %v782_v32 = vsel %vm250_vm0, %v2420_v6, %v781_v60  ;;  %v1888_v6 = vld [vmem:[%s3279_s1 + $0x410] sm:$0xff]  ;;  %v793_v60 = vrot.slane %v2999_v21, 1  ;;  %v3015_v37 = vrot.slane %v3006_v16, 1 }
  0xa7   : > { %1455 = vmatpush.msra.mxu0 %v1888_v6  ;;  %v3028_v6 = vld [vmem:[%s2255_s25 + $0xd0] sm:$0x3] }
  0xa8   : > { %v796_v17 = vrot.slane %v3028_v6, 1 }
  0xab   : > { %574 = vmatmul.f32.gmra.mxu2 %v2906_v2 }
  0xac   : > { %435 = vmatmul.f32.gmra.mxu1 %v2387_v58  ;;  %v1813_v58 = vld [vmem:[%s3279_s1 + $0x288] sm:$0xff] }
  0xad   : > { %999 = vmatpush.msra.mxu1 %v1813_v58  ;;  %v1831_v58 = vld [vmem:[%s2255_s25 + $0x38] sm:$0xff] }
  0xae   : > { %699 = vmatmul.f32.gmra.mxu3 %v2279_v18  ;;  %874 = vmatmul.f32.gmra.mxu0 %v782_v32  ;;  %v1216_v24 = vrot.slane %v1831_v58, 1 }
  0xaf   : > { %1000 = vmatpush.msra.mxu1 %v1812_v49 }
  0xb3   : > { %577 = vmatmul.f32.gmra.mxu2 %v484_v46  ;;  %v2928_v8 = vpop.f32.mrf.mxu1  ;;  %v1215_v46 = vrot.slane %v1830_v34, 1 }
  0xb4   : > { %438 = vmatmul.f32.gmra.mxu1 %v2390_v59  ;;  %v1887_v59 = vld [vmem:[%s3279_s1 + $0x408] sm:$0xff] }
  0xb5   : > { %1456 = vmatpush.msra.mxu0 %v1887_v59  ;;  %v1217_v28 = vsel %vm250_vm0, %v1215_v46, %v1216_v24 }
  0xb6   : > { %702 = vmatmul.f32.gmra.mxu3 %v2282_v19  ;;  %877 = vmatmul.f32.gmra.mxu0 %v2327_v35 }
  0xb7   : > { %1457 = vmatpush.msra.mxu0 %v1886_v31  ;;  %v915_v31 = vrot.slane %v2672_v56, 2 }
  0xb9   : > { %v2957_v35 = vpop.f32.mrf.mxu2  ;;  %v341_v45 = vpop.f32.mrf.mxu0 }
  0xbb   : > { %580 = vmatmul.f32.gmra.mxu2 %v2955_v5  ;;  %v2962_v7 = vpop.f32.mrf.mxu3 }
  0xbc   : > { %441 = vmatmul.f32.gmra.mxu1 %v2279_v18  ;;  %v2965_v40 = vpop.f32.mrf.mxu1  ;;  %v942_v18 = vrot.slane %v2433_v11, 2 }
  0xbe   : > { %705 = vmatmul.f32.gmra.mxu3 %v2433_v11  ;;  %880 = vmatmul.f32.gmra.mxu0 %v787_v27  ;;  %v1832_v27 = vld [vmem:[%s2255_s25 + $0x40] sm:$0x3] }
  0xc1   : > { %v2974_v48 = vpop.f32.mrf.mxu2 }
  0xc3   : > { %583 = vmatmul.f32.gmra.mxu2 %v489_v26 }
  0xc4   : > { %444 = vmatmul.f32.gmra.mxu1 %v2282_v19  ;;  %v2981_v38 = vpop.f32.mrf.mxu3  ;;  %v2993_v19 = vsel %vm454_vm1, %v942_v18, %v2979_v43  ;;  %v1369_v18 = vrot.slane %v1830_v34, 2 }
  0xc5   : > { %v2986_v23 = vpop.f32.mrf.mxu1 }
  0xc6   : > { %708 = vmatmul.f32.gmra.mxu3 %v2436_v12  ;;  %883 = vmatmul.f32.gmra.mxu0 %v2488_v47  ;;  %v493_v47 = vrot.slane %v2524_v61, 2  ;;  %v3021_v61 = vsel %vm250_vm0, %v793_v60, %v3015_v37 }
  0xc7   : > { %v344_v15 = vpop.f32.mrf.mxu0 }
  0xca   : > { %v2995_v53 = vpop.f32.mrf.mxu2 }
  0xcb   : > { %586 = vmatmul.f32.gmra.mxu2 %v2993_v19 }
  0xcc   : > { %447 = vmatmul.f32.gmra.mxu1 %v2433_v11  ;;  %v494_v11 = vsel %vm454_vm1, %v2979_v43, %v493_v47  ;;  %v1370_v47 = vrot.slane %v1831_v58, 2 }
  0xce   : > { %711 = vmatmul.f32.gmra.mxu3 %v2999_v21  ;;  %886 = vmatmul.f32.gmra.mxu0 %v792_v13  ;;  %v3009_v36 = vpop.f32.mrf.mxu3  ;;  %v1218_v13 = vrot.slane %v1832_v27, 1  ;;  %v1371_v56 = vsel %vm454_vm1, %v1369_v18, %v1370_v47 }
  0xcf   : > { %v3012_v32 = vpop.f32.mrf.mxu1 }
  0xd1   : > { %v347_v3 = vpop.f32.mrf.mxu0 }
  0xd3   : > { %589 = vmatmul.f32.gmra.mxu2 %v494_v11 }
  0xd4   : > { %450 = vmatmul.f32.gmra.mxu1 %v2436_v12  ;;  %v3024_v14 = vpop.f32.mrf.mxu2  ;;  %v797_v12 = vsel %vm250_vm0, %v3015_v37, %v796_v17  ;;  %v916_v17 = vsel %vm454_vm1, %v2666_v52, %v915_v31 }
  0xd6   : > { %714 = vmatmul.f32.gmra.mxu3 %v3006_v16  ;;  %889 = vmatmul.f32.gmra.mxu0 %v3021_v61 }
  0xd8   : > { %v3034_v25 = vpop.f32.mrf.mxu3 }
  0xd9   : > { %3283 = vst [vmem:[#allocation5_spill] sm:$0xff] %v3034_v25  ;;  %v406_v59 = vpop.f32.mrf.mxu1 }
  0xda   : > { %v407_v44 = vadd.f32 %v406_v59, %v341_v45 }
  0xdb   : > { %v350_v49 = vpop.f32.mrf.mxu0  ;;  %1126 = vmatmul.f32.vlgmr.msra.gmra.mxu2 %v1830_v34 }
  0xdc   : > { %1001 = vmatmul.f32.vlgmr.msra.gmra.mxu1 %v2700_v4  ;;  %v1219_v4 = vsel %vm250_vm0, %v1216_v24, %v1218_v13  ;;  %v1835_v24 = vld [vmem:[%s2255_s25 + $0x58] sm:$0x3] }
  0xde   : > { %892 = vmatmul.f32.gmra.mxu0 %v797_v12  ;;  %1304 = vmatmul.f32.vlgmr.msra.gmra.mxu3 %v1217_v28  ;;  %v545_v26 = vpop.f32.mrf.mxu2  ;;  %v1372_v12 = vrot.slane %v1832_v27, 2 }
  0xdf   : > { %v593_v33 = vadd.f32 %v545_v26, %v407_v44  ;;  %v920_v26 = vrot.slane %v2746_v42, 2 }
  0xe1   : > { %v409_v60 = vpop.f32.mrf.mxu1  ;;  %v670_v11 = vpop.f32.mrf.mxu3 }
  0xe2   : > { %v3044_v25 = vadd.f32 %v670_v11, %v593_v33  ;;  %v410_v45 = vadd.f32 %v409_v60, %v344_v15  ;;  %v1223_v33 = vrot.slane %v1835_v24, 1 }
  0xe3   : > { %v3046_v46 = vpop.f32.mrf.mxu0  ;;  %1129 = vmatmul.f32.gmra.mxu2 %v1831_v58  ;;  %v1373_v58 = vsel %vm454_vm1, %v1370_v47, %v1372_v12 }
  0xe4   : > { %1004 = vmatmul.f32.gmra.mxu1 %v916_v17  ;;  %v1224_v42 = vsel %vm250_vm0, %v2430_v10, %v1223_v33 }
  0xe6   : > { %1307 = vmatmul.f32.gmra.mxu3 %v1219_v4  ;;  %1458 = vmatmul.f32.vlgmr.msra.gmra.mxu0 %v1371_v56  ;;  %v548_v34 = vpop.f32.mrf.mxu2 }
  0xe7   : > { %v594_v59 = vadd.f32 %v548_v34, %v410_v45  ;;  %v1377_v45 = vrot.slane %v1835_v24, 2 }
  0xe9   : > { %v412_v28 = vpop.f32.mrf.mxu1  ;;  %v673_v44 = vpop.f32.mrf.mxu3 }
  0xea   : > { %v3050_v52 = vadd.f32 %v673_v44, %v594_v59  ;;  %v413_v15 = vadd.f32 %v412_v28, %v347_v3  ;;  %v1837_v3 = vld [vmem:[%s2255_s25 + $0x68] sm:$0xff]  ;;  %v1838_v28 = vld [vmem:[%s2255_s25 + $0x70] sm:$0x3] }
  0xeb   : > { %v3052_v31 = vpop.f32.mrf.mxu0  ;;  %1132 = vmatmul.f32.gmra.mxu2 %v2398_v62  ;;  %v921_v62 = vsel %vm454_vm1, %v2743_v41, %v920_v26  ;;  %v1226_v56 = vrot.slane %v1837_v3, 1 }
  0xec   : > { %1007 = vmatmul.f32.gmra.mxu1 %v2765_v50 }
  0xee   : > { %1310 = vmatmul.f32.gmra.mxu3 %v2464_v39  ;;  %1461 = vmatmul.f32.gmra.mxu0 %v1373_v58  ;;  %v551_v27 = vpop.f32.mrf.mxu2  ;;  %v1836_v39 = vld [vmem:[%s2255_s25 + $0x60] sm:$0xff]  ;;  %v925_v58 = vrot.slane %v2793_v1, 2 }
  0xef   : > { %v595_v18 = vadd.f32 %v551_v27, %v413_v15  ;;  %v1225_v41 = vrot.slane %v1836_v39, 1  ;;  %v1379_v15 = vrot.slane %v1836_v39, 2  ;;  %v1228_v27 = vrot.slane %v1838_v28, 1 }
  0xf1   : > { %v415_v13 = vpop.f32.mrf.mxu1  ;;  %v676_v60 = vpop.f32.mrf.mxu3  ;;  %v1227_v10 = vsel %vm250_vm0, %v1225_v41, %v1226_v56  ;;  %v1229_v1 = vsel %vm250_vm0, %v1226_v56, %v1228_v27 }
  0xf2   : > { %v3062_v47 = vadd.f32 %v676_v60, %v595_v18  ;;  %v416_v11 = vadd.f32 %v415_v13, %v350_v49  ;;  %v1378_v49 = vsel %vm454_vm1, %v2790_v0, %v1377_v45  ;;  %v1380_v18 = vrot.slane %v1837_v3, 2 }
  0xf3   : > { %v3064_v50 = vpop.f32.mrf.mxu0  ;;  %1135 = vmatmul.f32.gmra.mxu2 %v2401_v63  ;;  %v926_v60 = vsel %vm454_vm1, %v2790_v0, %v925_v58  ;;  %v1382_v45 = vrot.slane %v1838_v28, 2  ;;  %v930_v58 = vrot.slane %v2840_v51, 2 }
  0xf4   : > { %1010 = vmatmul.f32.gmra.mxu1 %v921_v62 }
  0xf6   : > { %1313 = vmatmul.f32.gmra.mxu3 %v1224_v42  ;;  %1464 = vmatmul.f32.gmra.mxu0 %v2812_v9  ;;  %v554_v17 = vpop.f32.mrf.mxu2  ;;  %v1839_v42 = vld [vmem:[%s2255_s25 + $0x78] sm:$0xff] }
  0xf7   : > { %v596_v4 = vadd.f32 %v554_v17, %v416_v11  ;;  %v1230_v0 = vrot.slane %v1839_v42, 1 }
  0xf9   : > { %v418_v34 = vpop.f32.mrf.mxu1  ;;  %v679_v59 = vpop.f32.mrf.mxu3 }
  0xfa   : > { %v3072_v12 = vadd.f32 %v679_v59, %v596_v4  ;;  %v419_v44 = vadd.f32 %v418_v34, %v2928_v8  ;;  %v1381_v8 = vsel %vm454_vm1, %v1379_v15, %v1380_v18 }
  0xfb   : > { %v3074_v63 = vpop.f32.mrf.mxu0  ;;  %1138 = vmatmul.f32.gmra.mxu2 %v1836_v39  ;;  %v1840_v39 = vld [vmem:[%s2255_s25 + $0x80] sm:$0xff] }
  0xfc   : > { %1013 = vmatmul.f32.gmra.mxu1 %v2812_v9  ;;  %v1231_v41 = vrot.slane %v1840_v39, 1  ;;  %v1385_v27 = vrot.slane %v1840_v39, 2 }
  0xfe   : > { %1316 = vmatmul.f32.gmra.mxu3 %v1227_v10  ;;  %1467 = vmatmul.f32.gmra.mxu0 %v1378_v49  ;;  %v557_v24 = vpop.f32.mrf.mxu2  ;;  %v1232_v10 = vsel %vm250_vm0, %v1230_v0, %v1231_v41  ;;  %v1383_v49 = vsel %vm454_vm1, %v1380_v18, %v1382_v45  ;;  %v931_v18 = vsel %vm454_vm1, %v2837_v54, %v930_v58 }
  0xff   : > { %v597_v26 = vadd.f32 %v557_v24, %v419_v44  ;;  %v1384_v24 = vrot.slane %v1839_v42, 2 }
 0x101   : > { %v421_v33 = vpop.f32.mrf.mxu1  ;;  %v682_v13 = vpop.f32.mrf.mxu3 }
 0x102   : > { %v3085_v9 = vadd.f32 %v682_v13, %v597_v26  ;;  %v422_v11 = vadd.f32 %v421_v33, %v2965_v40  ;;  %v1841_v40 = vld [vmem:[%s2255_s25 + $0x88] sm:$0x3] }
 0x103   : > { %v3087_v62 = vpop.f32.mrf.mxu0  ;;  %1141 = vmatmul.f32.gmra.mxu2 %v1837_v3  ;;  %v1233_v26 = vrot.slane %v1841_v40, 1  ;;  %v1387_v0 = vrot.slane %v1841_v40, 2 }
 0x104   : > { %1016 = vmatmul.f32.gmra.mxu1 %v926_v60 }
 0x105   : > { %v1234_v51 = vsel %vm250_vm0, %v1231_v41, %v1233_v26 }
 0x106   : > { %1319 = vmatmul.f32.gmra.mxu3 %v1229_v1  ;;  %1470 = vmatmul.f32.gmra.mxu0 %v1381_v8  ;;  %v560_v17 = vpop.f32.mrf.mxu2  ;;  %v1842_v1 = vld [vmem:[%s2255_s25 + $0x90] sm:$0xff]  ;;  %v1843_v8 = vld [vmem:[%s2255_s25 + $0x98] sm:$0xff] }
 0x107   : > { %v598_v4 = vadd.f32 %v560_v17, %v422_v11  ;;  %v1235_v54 = vrot.slane %v1842_v1, 1  ;;  %v1389_v58 = vrot.slane %v1842_v1, 2 }
 0x109   : > { %v424_v34 = vpop.f32.mrf.mxu1  ;;  %v685_v59 = vpop.f32.mrf.mxu3 }
 0x10a   : > { %v3094_v3 = vadd.f32 %v685_v59, %v598_v4  ;;  %v425_v44 = vadd.f32 %v424_v34, %v2986_v23  ;;  %v1386_v23 = vsel %vm454_vm1, %v1384_v24, %v1385_v27  ;;  %v1236_v4 = vrot.slane %v1843_v8, 1 }
 0x10b   : > { %v3096_v56 = vpop.f32.mrf.mxu0  ;;  %1144 = vmatmul.f32.gmra.mxu2 %v1839_v42 }
 0x10c   : > { %1019 = vmatmul.f32.gmra.mxu1 %v2859_v55  ;;  %v1237_v59 = vsel %vm250_vm0, %v1235_v54, %v1236_v4 }
 0x10e   : > { %1322 = vmatmul.f32.gmra.mxu3 %v1232_v10  ;;  %1473 = vmatmul.f32.gmra.mxu0 %v1383_v49  ;;  %v563_v28 = vpop.f32.mrf.mxu2  ;;  %v1388_v10 = vsel %vm454_vm1, %v1385_v27, %v1387_v0 }
 0x10f   : > { %v599_v15 = vadd.f32 %v563_v28, %v425_v44  ;;  %v935_v44 = vrot.slane %v2887_v29, 2 }
 0x111   : > { %v427_v33 = vpop.f32.mrf.mxu1  ;;  %v688_v13 = vpop.f32.mrf.mxu3  ;;  %v936_v27 = vsel %vm454_vm1, %v2884_v57, %v935_v44  ;;  %v940_v44 = vrot.slane %v2936_v22, 2 }
 0x112   : > { %v3106_v55 = vadd.f32 %v688_v13, %v599_v15  ;;  %v428_v42 = vadd.f32 %v427_v33, %v3012_v32  ;;  %v1844_v32 = vld [vmem:[%s2255_s25 + $0xa0] sm:$0x3]  ;;  %v1390_v15 = vrot.slane %v1843_v8, 2 }
 0x113   : > { %v3108_v60 = vpop.f32.mrf.mxu0  ;;  %1147 = vmatmul.f32.gmra.mxu2 %v1840_v39  ;;  %v1238_v24 = vrot.slane %v1844_v32, 1  ;;  %v1392_v54 = vrot.slane %v1844_v32, 2 }
 0x114   : > { %1022 = vmatmul.f32.gmra.mxu1 %v931_v18  ;;  %v1391_v29 = vsel %vm454_vm1, %v1389_v58, %v1390_v15 }
 0x116   : > { %1325 = vmatmul.f32.gmra.mxu3 %v1234_v51  ;;  %1476 = vmatmul.f32.gmra.mxu0 %v1386_v23  ;;  %v566_v11 = vpop.f32.mrf.mxu2  ;;  %v1845_v51 = vld [vmem:[%s2255_s25 + $0xa8] sm:$0xff]  ;;  %v1846_v23 = vld [vmem:[%s2255_s25 + $0xb0] sm:$0xff] }
 0x117   : > { %v600_v17 = vadd.f32 %v566_v11, %v428_v42  ;;  %v1240_v57 = vrot.slane %v1845_v51, 1 }
 0x119   : > { %v430_v45 = vpop.f32.mrf.mxu1  ;;  %v691_v34 = vpop.f32.mrf.mxu3 }
 0x11a   : > { %v3115_v39 = vadd.f32 %v691_v34, %v600_v17  ;;  %v431_v49 = vadd.f32 %v430_v45, %v2957_v35  ;;  %v1239_v35 = vsel %vm250_vm0, %v1236_v4, %v1238_v24  ;;  %v1241_v17 = vrot.slane %v1846_v23, 1 }
 0x11b   : > { %v3117_v41 = vpop.f32.mrf.mxu0  ;;  %1150 = vmatmul.f32.gmra.mxu2 %v1842_v1  ;;  %v1395_v24 = vrot.slane %v1846_v23, 2 }
 0x11c   : > { %1025 = vmatmul.f32.gmra.mxu1 %v2906_v2  ;;  %v1242_v34 = vsel %vm250_vm0, %v1240_v57, %v1241_v17 }
 0x11e   : > { %1328 = vmatmul.f32.gmra.mxu3 %v1237_v59  ;;  %1479 = vmatmul.f32.gmra.mxu0 %v1388_v10  ;;  %v569_v40 = vpop.f32.mrf.mxu2  ;;  %v1393_v59 = vsel %vm454_vm1, %v1390_v15, %v1392_v54  ;;  %v941_v15 = vsel %vm454_vm1, %v2933_v20, %v940_v44  ;;  %v945_v54 = vrot.slane %v2984_v30, 2 }
 0x11f   : > { %v601_v28 = vadd.f32 %v569_v40, %v431_v49  ;;  %v1394_v40 = vrot.slane %v1845_v51, 2 }
 0x121   : > { %v433_v26 = vpop.f32.mrf.mxu1  ;;  %v694_v33 = vpop.f32.mrf.mxu3 }
 0x122   : > { %v726_v2 = vadd.f32 %v694_v33, %v601_v28  ;;  %v434_v1 = vadd.f32 %v433_v26, %v2974_v48  ;;  %v1847_v48 = vld [vmem:[%s2255_s25 + $0xb8] sm:$0x3] }
 0x123   : > { %v872_v13 = vpop.f32.mrf.mxu0  ;;  %1153 = vmatmul.f32.gmra.mxu2 %v1843_v8  ;;  %v1243_v28 = vrot.slane %v1847_v48, 1 }
 0x124   : > { %v3129_v18 = vadd.f32 %v872_v13, %v726_v2  ;;  %1028 = vmatmul.f32.gmra.mxu1 %v936_v27 }
 0x126   : > { %1331 = vmatmul.f32.gmra.mxu3 %v1239_v35  ;;  %1482 = vmatmul.f32.gmra.mxu0 %v1391_v29  ;;  %v572_v42 = vpop.f32.mrf.mxu2 }
 0x127   : > { %v602_v11 = vadd.f32 %v572_v42, %v434_v1 }
 0x129   : > { %v436_v8 = vpop.f32.mrf.mxu1  ;;  %v697_v0 = vpop.f32.mrf.mxu3 }
 0x12a   : > { %v727_v4 = vadd.f32 %v697_v0, %v602_v11  ;;  %v437_v49 = vadd.f32 %v436_v8, %v2995_v53  ;;  %v1396_v53 = vsel %vm454_vm1, %v1394_v40, %v1395_v24  ;;  %v947_v0 = vrot.slane %v2999_v21, 2 }
 0x12b   : > { %v875_v45 = vpop.f32.mrf.mxu0  ;;  %1156 = vmatmul.f32.gmra.mxu2 %v1845_v51  ;;  %v1397_v51 = vrot.slane %v1847_v48, 2 }
 0x12c   : > { %v3136_v10 = vadd.f32 %v875_v45, %v727_v4  ;;  %1031 = vmatmul.f32.gmra.mxu1 %v2955_v5  ;;  %v1244_v5 = vsel %vm250_vm0, %v1241_v17, %v1243_v28  ;;  %v1850_v17 = vld [vmem:[%s2255_s25 + $0xd0] sm:$0x3]  ;;  %v948_v4 = vrot.slane %v3006_v16, 2 }
 0x12e   : > { %1334 = vmatmul.f32.gmra.mxu3 %v1242_v34  ;;  %1485 = vmatmul.f32.gmra.mxu0 %v1393_v59  ;;  %v575_v32 = vpop.f32.mrf.mxu2  ;;  %v1248_v34 = vrot.slane %v1850_v17, 1 }
 0x12f   : > { %v603_v58 = vadd.f32 %v575_v32, %v437_v49  ;;  %v1852_v32 = vld [vmem:[%s2255_s25 + $0xe0] sm:$0xff] }
 0x130   : > { %v1249_v30 = vsel %vm250_vm0, %v3015_v37, %v1248_v34 }
 0x131   : > { %v439_v26 = vpop.f32.mrf.mxu1  ;;  %v700_v33 = vpop.f32.mrf.mxu3 }
 0x132   : > { %v728_v27 = vadd.f32 %v700_v33, %v603_v58  ;;  %v440_v13 = vadd.f32 %v439_v26, %v3024_v14 }
 0x133   : > { %v878_v2 = vpop.f32.mrf.mxu0  ;;  %1159 = vmatmul.f32.gmra.mxu2 %v1846_v23  ;;  %v1398_v23 = vsel %vm454_vm1, %v1395_v24, %v1397_v51  ;;  %v1251_v24 = vrot.slane %v1852_v32, 1 }
 0x134   : > { %v3146_v22 = vadd.f32 %v878_v2, %v728_v27  ;;  %1034 = vmatmul.f32.gmra.mxu1 %v941_v15 }
 0x136   : > { %1337 = vmatmul.f32.gmra.mxu3 %v1244_v5  ;;  %1488 = vmatmul.f32.gmra.mxu0 %v1396_v53  ;;  %v578_v35 = vpop.f32.mrf.mxu2 }
 0x137   : > { %v604_v29 = vadd.f32 %v578_v35, %v440_v13  ;;  %v950_v13 = vrot.slane %v3028_v6, 2  ;;  %v3284_v6 = vld [vmem:[#allocation5_spill] sm:$0xff] }
 0x139   : > { %v442_v1 = vpop.f32.mrf.mxu1  ;;  %v703_v20 = vpop.f32.mrf.mxu3 }
 0x13a   : > { %v729_v42 = vadd.f32 %v703_v20, %v604_v29  ;;  %v443_v14 = vadd.f32 %v442_v1, %v2962_v7  ;;  %v1405_v20 = vrot.slane %v1852_v32, 2 }
 0x13b   : > { %v881_v11 = vpop.f32.mrf.mxu0  ;;  %1162 = vmatmul.f32.gmra.mxu2 %v2999_v21  ;;  %v1851_v21 = vld [vmem:[%s2255_s25 + $0xd8] sm:$0xff] }
 0x13c   : > { %v3151_v57 = vadd.f32 %v881_v11, %v729_v42  ;;  %1037 = vmatmul.f32.gmra.mxu1 %v2993_v19  ;;  %v946_v19 = vsel %vm454_vm1, %v2979_v43, %v945_v54  ;;  %v1250_v28 = vrot.slane %v1851_v21, 1  ;;  %v1404_v29 = vrot.slane %v1851_v21, 2 }
 0x13e   : > { %1340 = vmatmul.f32.gmra.mxu3 %v3021_v61  ;;  %1491 = vmatmul.f32.gmra.mxu0 %v1398_v23  ;;  %v581_v8 = vpop.f32.mrf.mxu2  ;;  %v1401_v61 = vsel %vm454_vm1, %v947_v0, %v948_v4  ;;  %v1252_v27 = vsel %vm250_vm0, %v1250_v28, %v1251_v24  ;;  %v951_v23 = vsel %vm454_vm1, %v948_v4, %v950_v13 }
 0x13f   : > { %v605_v45 = vadd.f32 %v581_v8, %v443_v14 }
 0x141   : > { %v445_v59 = vpop.f32.mrf.mxu1  ;;  %v706_v48 = vpop.f32.mrf.mxu3 }
 0x142   : > { %v730_v7 = vadd.f32 %v706_v48, %v605_v45  ;;  %v446_v40 = vadd.f32 %v445_v59, %v2981_v38  ;;  %v1853_v38 = vld [vmem:[%s2255_s25 + $0xe8] sm:$0x3]  ;;  %s170_s25 = sand.u32 1, %s2102_s10  }
 0x143   : > { %v884_v49 = vpop.f32.mrf.mxu0  ;;  %1165 = vmatmul.f32.gmra.mxu2 %v3006_v16  ;;  %v1402_v16 = vrot.slane %v1850_v17, 2  ;;  %v1253_v1 = vrot.slane %v1853_v38, 1  ;;  %v1407_v59 = vrot.slane %v1853_v38, 2  ;;  %s1718_s26 = sshll.u32 %s170_s25, 7  ;;  %s1588_s8 = scalar_lea.sflag [#allocation3], %s170_s25 }
 0x144   : > { %v3166_v44 = vadd.f32 %v884_v49, %v730_v7  ;;  %1040 = vmatmul.f32.gmra.mxu1 %v946_v19  ;;  %v896_v7 = vadd.f32 %v3046_v46, %v3044_v25  ;;  %s3194_s28 = scalar_lea.vmem [#allocation2], %s1718_s26  ;;  %s2052_s26 = scalar_lea.hbm %s3280_s2, 512 }
 0x145   : > { %v1403_v2 = vsel %vm454_vm1, %v948_v4, %v1402_v16  ;;  %v1254_v54 = vsel %vm250_vm0, %v1251_v24, %v1253_v1  ;;  %v897_v24 = vadd.f32 %v3052_v31, %v3050_v52  ;;  %v898_v52 = vadd.f32 %v3064_v50, %v3062_v47  ;;  %s1604_s6 = sshll.u32 %s3194_s28, 4  ;;  %p2054_p4 = scmp.lt.s32.totalorder %s2052_s26, %s2048_s18  ;;  %s1605_s6 = int_to_ptr.vmem [resolvable:$true] %s1604_s6 }
 0x146   : > { %1343 = vmatmul.f32.gmra.mxu3 %v1249_v30  ;;  %1494 = vmatmul.f32.gmra.mxu0 %v1401_v61  ;;  %v584_v43 = vpop.f32.mrf.mxu2  ;;  %v1408_v30 = vsel %vm454_vm1, %v1405_v20, %v1407_v59  ;;  %v900_v59 = vadd.f32 %v3087_v62, %v3085_v9 }
 0x147   : > { %v606_v58 = vadd.f32 %v584_v43, %v446_v40  ;;  %p2055_p5 = por %p2054_p4, %p2053_p2 }
 0x149   : > { %v448_v26 = vpop.f32.mrf.mxu1  ;;  %v709_v33 = vpop.f32.mrf.mxu3  ;;  %p2056_p6 = pnand %p2055_p5, %p2051_p1 }
 0x14a   : > { %v731_v37 = vadd.f32 %v709_v33, %v606_v58  ;;  %v449_v53 = vadd.f32 %v448_v26, %v3009_v36  ;;  %v1406_v36 = vsel %vm454_vm1, %v1404_v29, %v1405_v20 }
 0x14b   : > { %v887_v15 = vpop.f32.mrf.mxu0  ;;  %1168 = vmatmul.f32.gmra.mxu2 %v1851_v21 }
 0x14c   : > { %v3173_v5 = vadd.f32 %v887_v15, %v731_v37  ;;  %1043 = vmatmul.f32.gmra.mxu1 %v1401_v61 }
 0x14e   : > { %1346 = vmatmul.f32.gmra.mxu3 %v1252_v27  ;;  %1497 = vmatmul.f32.gmra.mxu0 %v1403_v2  ;;  %v587_v35 = vpop.f32.mrf.mxu2 }
 0x14f   : > { %v607_v51 = vadd.f32 %v587_v35, %v449_v53 }
 0x151   : > { %v451_v42 = vpop.f32.mrf.mxu1  ;;  %v712_v11 = vpop.f32.mrf.mxu3 }
 0x152   : > { %v732_v17 = vadd.f32 %v712_v11, %v607_v51  ;;  %v452_v0 = vadd.f32 %v451_v42, %v3284_v6 }
 0x153   : > { %v890_v14 = vpop.f32.mrf.mxu0  ;;  %1171 = vmatmul.f32.gmra.mxu2 %v1852_v32 }
 0x154   : > { %v3181_v8 = vadd.f32 %v890_v14, %v732_v17  ;;  %1046 = vmatmul.f32.gmra.mxu1 %v951_v23  ;;  %v899_v23 = vadd.f32 %v3074_v63, %v3072_v12 }
 0x156   : > { %1349 = vmatmul.f32.gmra.mxu3 %v1254_v54  ;;  %1500 = vmatmul.f32.gmra.mxu0 %v1406_v36  ;;  %v590_v45 = vpop.f32.mrf.mxu2 }
 0x157   : > { %v608_v34 = vadd.f32 %v590_v45, %v452_v0 }
 0x159   : > { %v715_v48 = vpop.f32.mrf.mxu3  ;;  %v1002_v4 = vpop.f32.mrf.mxu1 }
 0x15a   : > { %v733_v19 = vadd.f32 %v715_v48, %v608_v34  ;;  %v1050_v21 = vadd.f32 %v1002_v4, %v896_v7 }
 0x15b   : > { %v893_v49 = vpop.f32.mrf.mxu0 }
 0x15c   : > { %v3187_v61 = vadd.f32 %v893_v49, %v733_v19 }
 0x15e   : > { %1503 = vmatmul.f32.gmra.mxu0 %v1408_v30  ;;  %v1127_v32 = vpop.f32.mrf.mxu2 }
 0x15f   : > { %v1175_v40 = vadd.f32 %v1127_v32, %v1050_v21 }
 0x161   : > { %v1005_v43 = vpop.f32.mrf.mxu1  ;;  %v1305_v58 = vpop.f32.mrf.mxu3 }
 0x162   : > { %v1353_v28 = vadd.f32 %v1305_v58, %v1175_v40  ;;  %v1051_v46 = vadd.f32 %v1005_v43, %v897_v24  ;;  %v901_v40 = vadd.f32 %v3096_v56, %v3094_v3 }
 0x163   : > { %v1459_v16 = vpop.f32.mrf.mxu0 }
 0x164   : > { %v1507_v25 = vadd.f32 %v1459_v16, %v1353_v28 }
 0x166   : > { %vm1523_vm2 = vcmp.ge.f32.partialorder %v1507_v25, 0.0  ;;  %v1539_v26 = vmul.f32 0.2, %v1507_v25  ;;  %v1130_v33 = vpop.f32.mrf.mxu2 }
 0x167   : > { %v1176_v37 = vadd.f32 %v1130_v33, %v1051_v46  ;;  %v902_v33 = vadd.f32 %v3108_v60, %v3106_v55 }
 0x168   : > { %v1555_v15 = vsel %vm1523_vm2, %v1507_v25, %v1539_v26 }
 0x169   : > { %1571 = vst [vmem:[%s3194_s28] sm:$0xff] %v1555_v15  ;;  %v1008_v27 = vpop.f32.mrf.mxu1  ;;  %v1308_v2 = vpop.f32.mrf.mxu3 }
 0x16a   : > { %v1354_v38 = vadd.f32 %v1308_v2, %v1176_v37  ;;  %v1052_v13 = vadd.f32 %v1008_v27, %v898_v52 }
 0x16b   : > { %v1462_v31 = vpop.f32.mrf.mxu0 }
 0x16c   : > { %v1508_v53 = vadd.f32 %v1462_v31, %v1354_v38 }
 0x16e   : > { %vm1524_vm3 = vcmp.ge.f32.partialorder %v1508_v53, 0.0  ;;  %v1540_v35 = vmul.f32 0.2, %v1508_v53  ;;  %v1133_v29 = vpop.f32.mrf.mxu2 }
 0x16f   : > { %v1177_v51 = vadd.f32 %v1133_v29, %v1052_v13  ;;  %v903_v13 = vadd.f32 %v3117_v41, %v3115_v39 }
 0x170   : > { %v1556_v1 = vsel %vm1524_vm3, %v1508_v53, %v1540_v35 }
 0x171   : > { %1572 = vst [vmem:[%s3194_s28 + $0x8] sm:$0xff] %v1556_v1  ;;  %v1011_v20 = vpop.f32.mrf.mxu1  ;;  %v1311_v42 = vpop.f32.mrf.mxu3 }
 0x172   : > { %v1355_v11 = vadd.f32 %v1311_v42, %v1177_v51  ;;  %v1053_v54 = vadd.f32 %v1011_v20, %v899_v23 }
 0x173   : > { %v1465_v17 = vpop.f32.mrf.mxu0 }
 0x174   : > { %v1509_v14 = vadd.f32 %v1465_v17, %v1355_v11 }
 0x176   : > { %vm1525_vm4 = vcmp.ge.f32.partialorder %v1509_v14, 0.0  ;;  %v1541_v47 = vmul.f32 0.2, %v1509_v14  ;;  %v1136_v50 = vpop.f32.mrf.mxu2 }
 0x177   : > { %v1178_v36 = vadd.f32 %v1136_v50, %v1053_v54 }
 0x178   : > { %v1557_v6 = vsel %vm1525_vm4, %v1509_v14, %v1541_v47 }
 0x179   : > { %1573 = vst [vmem:[%s3194_s28 + $0x10] sm:$0xff] %v1557_v6  ;;  %v1014_v0 = vpop.f32.mrf.mxu1  ;;  %v1314_v45 = vpop.f32.mrf.mxu3 }
 0x17a   : > { %v1356_v34 = vadd.f32 %v1314_v45, %v1178_v36  ;;  %v1054_v19 = vadd.f32 %v1014_v0, %v900_v59 }
 0x17b   : > { %v1468_v48 = vpop.f32.mrf.mxu0 }
 0x17c   : > { %v1510_v4 = vadd.f32 %v1468_v48, %v1356_v34 }
 0x17e   : > { %vm1526_vm5 = vcmp.ge.f32.partialorder %v1510_v4, 0.0  ;;  %v1542_v12 = vmul.f32 0.2, %v1510_v4  ;;  %v1139_v63 = vpop.f32.mrf.mxu2 }
 0x17f   : > { %v1179_v7 = vadd.f32 %v1139_v63, %v1054_v19 }
 0x180   : > { %v1558_v49 = vsel %vm1526_vm5, %v1510_v4, %v1542_v12 }
 0x181   : > { %1574 = vst [vmem:[%s3194_s28 + $0x18] sm:$0xff] %v1558_v49  ;;  %v1017_v30 = vpop.f32.mrf.mxu1  ;;  %v1317_v21 = vpop.f32.mrf.mxu3 }
 0x182   : > { %v1357_v32 = vadd.f32 %v1317_v21, %v1179_v7  ;;  %v1055_v28 = vadd.f32 %v1017_v30, %v901_v40 }
 0x183   : > { %v1471_v43 = vpop.f32.mrf.mxu0 }
 0x184   : > { %v1511_v58 = vadd.f32 %v1471_v43, %v1357_v32 }
 0x186   : > { %vm1527_vm6 = vcmp.ge.f32.partialorder %v1511_v58, 0.0  ;;  %v1543_v9 = vmul.f32 0.2, %v1511_v58  ;;  %v1142_v62 = vpop.f32.mrf.mxu2 }
 0x187   : > { %v1180_v24 = vadd.f32 %v1142_v62, %v1055_v28 }
 0x188   : > { %v1559_v16 = vsel %vm1527_vm6, %v1511_v58, %v1543_v9 }
 0x189   : > { %1575 = vst [vmem:[%s3194_s28 + $0x20] sm:$0xff] %v1559_v16  ;;  %v1020_v25 = vpop.f32.mrf.mxu1  ;;  %v1320_v46 = vpop.f32.mrf.mxu3 }
 0x18a   : > { %v1358_v26 = vadd.f32 %v1320_v46, %v1180_v24  ;;  %v1056_v27 = vadd.f32 %v1020_v25, %v902_v33 }
 0x18b   : > { %v1474_v37 = vpop.f32.mrf.mxu0 }
 0x18c   : > { %v1512_v15 = vadd.f32 %v1474_v37, %v1358_v26 }
 0x18e   : > { %vm1528_vm7 = vcmp.ge.f32.partialorder %v1512_v15, 0.0  ;;  %v1544_v3 = vmul.f32 0.2, %v1512_v15  ;;  %v1145_v56 = vpop.f32.mrf.mxu2 }
 0x18f   : > { %v1181_v2 = vadd.f32 %v1145_v56, %v1056_v27 }
 0x190   : > { %v1560_v38 = vsel %vm1528_vm7, %v1512_v15, %v1544_v3 }
 0x191   : > { %1576 = vst [vmem:[%s3194_s28 + $0x28] sm:$0xff] %v1560_v38  ;;  %v1023_v52 = vpop.f32.mrf.mxu1  ;;  %v1323_v31 = vpop.f32.mrf.mxu3 }
 0x192   : > { %v1359_v53 = vadd.f32 %v1323_v31, %v1181_v2  ;;  %v1057_v51 = vadd.f32 %v1023_v52, %v903_v13 }
 0x193   : > { %v1477_v35 = vpop.f32.mrf.mxu0 }
 0x194   : > { %v1513_v29 = vadd.f32 %v1477_v35, %v1359_v53 }
 0x196   : > { %vm1529_vm8 = vcmp.ge.f32.partialorder %v1513_v29, 0.0  ;;  %v1545_v55 = vmul.f32 0.2, %v1513_v29  ;;  %v1148_v60 = vpop.f32.mrf.mxu2 }
 0x197   : > { %v1182_v1 = vadd.f32 %v1148_v60, %v1057_v51 }
 0x198   : > { %v1561_v20 = vsel %vm1529_vm8, %v1513_v29, %v1545_v55 }
 0x199   : > { %1577 = vst [vmem:[%s3194_s28 + $0x30] sm:$0xff] %v1561_v20  ;;  %v1026_v42 = vpop.f32.mrf.mxu1  ;;  %v1326_v11 = vpop.f32.mrf.mxu3 }
 0x19a   : > { %v1360_v23 = vadd.f32 %v1326_v11, %v1182_v1  ;;  %v1058_v54 = vadd.f32 %v1026_v42, %v3129_v18 }
 0x19b   : > { %v1480_v17 = vpop.f32.mrf.mxu0 }
 0x19c   : > { %v1514_v14 = vadd.f32 %v1480_v17, %v1360_v23 }
 0x19e   : > { %vm1530_vm9 = vcmp.ge.f32.partialorder %v1514_v14, 0.0  ;;  %v1546_v47 = vmul.f32 0.2, %v1514_v14  ;;  %v1151_v39 = vpop.f32.mrf.mxu2 }
 0x19f   : > { %v1183_v41 = vadd.f32 %v1151_v39, %v1058_v54 }
 0x1a0   : > { %v1562_v50 = vsel %vm1530_vm9, %v1514_v14, %v1546_v47 }
 0x1a1   : > { %1578 = vst [vmem:[%s3194_s28 + $0x38] sm:$0xff] %v1562_v50  ;;  %v1029_v36 = vpop.f32.mrf.mxu1  ;;  %v1329_v6 = vpop.f32.mrf.mxu3 }
 0x1a2   : > { %v1361_v0 = vadd.f32 %v1329_v6, %v1183_v41  ;;  %v1059_v59 = vadd.f32 %v1029_v36, %v3136_v10 }
 0x1a3   : > { %v1483_v45 = vpop.f32.mrf.mxu0 }
 0x1a4   : > { %v1515_v34 = vadd.f32 %v1483_v45, %v1361_v0 }
 0x1a6   : > { %vm1531_vm10 = vcmp.ge.f32.partialorder %v1515_v34, 0.0  ;;  %v1547_v48 = vmul.f32 0.2, %v1515_v34  ;;  %v1154_v4 = vpop.f32.mrf.mxu2 }
 0x1a7   : > { %v1184_v19 = vadd.f32 %v1154_v4, %v1059_v59 }
 0x1a8   : > { %v1563_v18 = vsel %vm1531_vm10, %v1515_v34, %v1547_v48 }
 0x1a9   : > { %1579 = vst [vmem:[%s3194_s28 + $0x40] sm:$0xff] %v1563_v18  ;;  %v1032_v12 = vpop.f32.mrf.mxu1  ;;  %v1332_v63 = vpop.f32.mrf.mxu3 }
 0x1aa   : > { %v1362_v7 = vadd.f32 %v1332_v63, %v1184_v19  ;;  %v1060_v21 = vadd.f32 %v1032_v12, %v3146_v22 }
 0x1ab   : > { %v1486_v49 = vpop.f32.mrf.mxu0 }
 0x1ac   : > { %v1516_v30 = vadd.f32 %v1486_v49, %v1362_v7 }
 0x1ae   : > { %vm1532_vm11 = vcmp.ge.f32.partialorder %v1516_v30, 0.0  ;;  %v1548_v32 = vmul.f32 0.2, %v1516_v30  ;;  %v1157_v40 = vpop.f32.mrf.mxu2 }
 0x1af   : > { %v1185_v43 = vadd.f32 %v1157_v40, %v1060_v21 }
 0x1b0   : > { %v1564_v10 = vsel %vm1532_vm11, %v1516_v30, %v1548_v32 }
 0x1b1   : > { %1580 = vst [vmem:[%s3194_s28 + $0x48] sm:$0xff] %v1564_v10  ;;  %v1035_v58 = vpop.f32.mrf.mxu1  ;;  %v1335_v28 = vpop.f32.mrf.mxu3 }
 0x1b2   : > { %v1363_v9 = vadd.f32 %v1335_v28, %v1185_v43  ;;  %v1061_v16 = vadd.f32 %v1035_v58, %v3151_v57 }
 0x1b3   : > { %v1489_v62 = vpop.f32.mrf.mxu0 }
 0x1b4   : > { %v1517_v24 = vadd.f32 %v1489_v62, %v1363_v9 }
 0x1b6   : > { %vm1533_vm12 = vcmp.ge.f32.partialorder %v1517_v24, 0.0  ;;  %v1549_v25 = vmul.f32 0.2, %v1517_v24  ;;  %v1160_v46 = vpop.f32.mrf.mxu2 }
 0x1b7   : > { %v1186_v26 = vadd.f32 %v1160_v46, %v1061_v16 }
 0x1b8   : > { %v1565_v22 = vsel %vm1533_vm12, %v1517_v24, %v1549_v25 }
 0x1b9   : > { %1581 = vst [vmem:[%s3194_s28 + $0x50] sm:$0xff] %v1565_v22  ;;  %v1038_v33 = vpop.f32.mrf.mxu1  ;;  %v1338_v37 = vpop.f32.mrf.mxu3 }
 0x1ba   : > { %v1364_v15 = vadd.f32 %v1338_v37, %v1186_v26  ;;  %v1062_v56 = vadd.f32 %v1038_v33, %v3166_v44 }
 0x1bb   : > { %v1492_v27 = vpop.f32.mrf.mxu0 }
 0x1bc   : > { %v1518_v3 = vadd.f32 %v1492_v27, %v1364_v15 }
 0x1be   : > { %vm1534_vm13 = vcmp.ge.f32.partialorder %v1518_v3, 0.0  ;;  %v1550_v2 = vmul.f32 0.2, %v1518_v3  ;;  %v1163_v38 = vpop.f32.mrf.mxu2 }
 0x1bf   : > { %v1187_v52 = vadd.f32 %v1163_v38, %v1062_v56 }
 0x1c0   : > { %v1566_v57 = vsel %vm1534_vm13, %v1518_v3, %v1550_v2 }
 0x1c1   : > { %1582 = vst [vmem:[%s3194_s28 + $0x58] sm:$0xff] %v1566_v57  ;;  %v1041_v31 = vpop.f32.mrf.mxu1  ;;  %v1341_v53 = vpop.f32.mrf.mxu3 }
 0x1c2   : > { %v1365_v13 = vadd.f32 %v1341_v53, %v1187_v52  ;;  %v1063_v51 = vadd.f32 %v1041_v31, %v3173_v5 }
 0x1c3   : > { %v1495_v35 = vpop.f32.mrf.mxu0 }
 0x1c4   : > { %v1519_v29 = vadd.f32 %v1495_v35, %v1365_v13 }
 0x1c6   : > { %vm1535_vm14 = vcmp.ge.f32.partialorder %v1519_v29, 0.0  ;;  %v1551_v55 = vmul.f32 0.2, %v1519_v29  ;;  %v1166_v60 = vpop.f32.mrf.mxu2 }
 0x1c7   : > { %v1188_v44 = vadd.f32 %v1166_v60, %v1063_v51 }
 0x1c8   : > { %v1567_v1 = vsel %vm1535_vm14, %v1519_v29, %v1551_v55 }
 0x1c9   : > { %1583 = vst [vmem:[%s3194_s28 + $0x60] sm:$0xff] %v1567_v1  ;;  %v1044_v20 = vpop.f32.mrf.mxu1  ;;  %v1344_v42 = vpop.f32.mrf.mxu3 }
 0x1ca   : > { %v1366_v11 = vadd.f32 %v1344_v42, %v1188_v44  ;;  %v1064_v14 = vadd.f32 %v1044_v20, %v3181_v8 }
 0x1cb   : > { %v1498_v23 = vpop.f32.mrf.mxu0 }
 0x1cc   : > { %v1520_v17 = vadd.f32 %v1498_v23, %v1366_v11 }
 0x1ce   : > { %vm1536_vm15 = vcmp.ge.f32.partialorder %v1520_v17, 0.0  ;;  %v1552_v54 = vmul.f32 0.2, %v1520_v17  ;;  %v1169_v47 = vpop.f32.mrf.mxu2 }
 0x1cf   : > { %v1189_v5 = vadd.f32 %v1169_v47, %v1064_v14 }
 0x1d0   : > { %v1568_v39 = vsel %vm1536_vm15, %v1520_v17, %v1552_v54 }
 0x1d1   : > { %1584 = vst [vmem:[%s3194_s28 + $0x68] sm:$0xff] %v1568_v39  ;;  %v1347_v41 = vpop.f32.mrf.mxu3  ;;  %v1047_v50 = vpop.f32.mrf.mxu1 }
 0x1d2   : > { %v1367_v36 = vadd.f32 %v1347_v41, %v1189_v5  ;;  %v1065_v45 = vadd.f32 %v1047_v50, %v3187_v61 }
 0x1d3   : > { %v1501_v6 = vpop.f32.mrf.mxu0 }
 0x1d4   : > { %v1521_v0 = vadd.f32 %v1501_v6, %v1367_v36 }
 0x1d6   : > { %vm1537_vm0 = vcmp.ge.f32.partialorder %v1521_v0, 0.0  ;;  %v1553_v8 = vmul.f32 0.2, %v1521_v0  ;;  %v1172_v34 = vpop.f32.mrf.mxu2 }
 0x1d7   : > { %v1190_v59 = vadd.f32 %v1172_v34, %v1065_v45 }
 0x1d8   : > { %v1569_v48 = vsel %vm1537_vm0, %v1521_v0, %v1553_v8 }
 0x1d9   : > { %1585 = vst [vmem:[%s3194_s28 + $0x70] sm:$0xff] %v1569_v48  ;;  %v1350_v4 = vpop.f32.mrf.mxu3 }
 0x1da   : > { %v1368_v19 = vadd.f32 %v1350_v4, %v1190_v59 }
 0x1db   : > { %v1504_v18 = vpop.f32.mrf.mxu0 }
 0x1dc   : > { %v1522_v61 = vadd.f32 %v1504_v18, %v1368_v19 }
 0x1de   : > { %vm1538_vm1 = vcmp.ge.f32.partialorder %v1522_v61, 0.0  ;;  %v1554_v12 = vmul.f32 0.2, %v1522_v61 }
 0x1e0   : > { %v1570_v63 = vsel %vm1538_vm1, %v1522_v61, %v1554_v12 }
 0x1e1   : > { %1586 = vst [vmem:[%s3194_s28 + $0x78] sm:$0xff] %v1570_v63 }
 0x1e2   : > { %2059 = shalt.err (!%p2056_p6)
}
 0x1e3   : > { %s2128_s25 = smov 128   ;;  %s2129_s28 = smov 8  }
 0x1e4   : > { %1959 = dma.vmem_to_hbm [thread:$0]  (%p2196_p3), %s1605_s6, 2048, %s1607_s7, %s1588_s8, %s2128_s25, %s2128_s25, %s2129_s28  }
 0x1e5 PF: > { %p1965_p7 = scmp.ge.s32.totalorder %s2126_s16, 2  ;;  %s1621_s3 = sand.u32 1, %s2098_s9  }
 0x1e6   : > { %s1622_s4 = scalar_lea.sflag [#allocation3], %s1621_s3 }
 0x1e7   : > { %p1962_p9 = pnand %p1965_p7, %p2205_p8 }
 0x1e9   : > { %p1963_p10 = pneg %p1962_p9 }
 0x1eb   : > { %2093 = dma.done.wait (%p1963_p10), %s1622_s4, 2048  }
 0x1ec   : > { %2095 = vsyncadd (%p1963_p10), %s1622_s4, 4294965248  ;;  %s15_s16 = sadd.s32 1, %s2126_s16   ;;  %s3285_s9 = smov %s2102_s10 }
 0x1ed   : > { %p12_p11 = scmp.ge.s32.totalorder %s15_s16, 6   ;;  %s3286_s10 = smov %s2106_s11 }
 0x1ee   : > { %s3287_s11 = smov %s2214_s27  ;;  %s3288_s12 = smov %s2118_s14 }
 0x1ef   : > { %s3289_s13 = smov %s2122_s15  ;;  %s3290_s14 = smov %s3293_s19 }
 0x1f0   : > { %s3291_s15 = smov %s3297_s20  ;;  %14 = sbr.rel (!%p12_p11) target bundleno = 5 (0x5), region = 77 }
 0x1f5   :  { %1628 = vsyncpa [#allocation3], 1 }
 0x1f6   :  { %1630 = vsyncpa [#allocation3 + $0x1], 1 }

</bundles_post_ra>
